<compile_context>
chip_gen: v6e
topology: v6e:2x2x1
jax: 0.10.0
libtpu: 0.0.40
codegen_flags: <defaults>
</compile_context>

<pallas_src>
import jax
import jax.numpy as jnp
from jax.experimental import pallas as pl
from jax.experimental.pallas import tpu as pltpu


def _round_up(a: int, b: int) -> int:
    return (a + b - 1) // b * b


# ---------------------------------------------------------------------------
# Pass 1: H = X @ W (bf16) and inv_t = 1 / (softplus(MLP(graph_features)) + 1e-6)
# ---------------------------------------------------------------------------
def wats_pre_kernel(x_ref, w_ref, gf_ref, w1_ref, b1_ref, w2_ref, b2_ref,
                    h_ref, invt_ref):
    # Backbone feature transform, hoisted out of the main (i, k) loop.
    h = jnp.dot(x_ref[...], w_ref[...], preferred_element_type=jnp.float32)
    h_ref[...] = h.astype(h_ref.dtype)

    # SimpleTempMLP (fc1 -> relu -> [dropout = eval no-op] -> fc2 -> softplus), f32.
    h1 = jnp.maximum(
        jnp.dot(gf_ref[...], w1_ref[...], preferred_element_type=jnp.float32)
        + b1_ref[...], 0.0)                                        # (TM, Hp)
    z = jnp.sum(h1 * w2_ref[...], axis=-1, keepdims=True) + b2_ref[...]   # (TM, 1)
    # Numerically stable softplus.
    t = jnp.maximum(z, 0.0) + jnp.log1p(jnp.exp(-jnp.abs(z)))
    # NOTE: zero-padded rows (node index >= N) get t = softplus(b2 + sum(relu(b1)*w2)),
    # which is finite and > 0, so their (exactly-zero) logits stay exactly zero.
    invt_ref[...] = pl.reciprocal(t + 1e-6, approx=True)           # EUP slot, ~free


# ---------------------------------------------------------------------------
# Pass 2: out = (A @ H) * inv_t   (streams the dense row-normalized adjacency)
# ---------------------------------------------------------------------------
def wats_main_kernel(adj_ref, h_ref, invt_ref, out_ref, acc_ref):
    k = pl.program_id(1)

    @pl.when(k == 0)
    def _init():
        acc_ref[...] = jnp.zeros_like(acc_ref)

    # acc += A[i-tile, k-tile] @ H[k-tile]   (bf16 MXU, f32 accumulate)
    acc_ref[...] += jnp.dot(adj_ref[...], h_ref[...],
                            preferred_element_type=jnp.float32)

    @pl.when(k == pl.num_programs(1) - 1)
    def _finalize():
        out_ref[...] = (acc_ref[...] * invt_ref[...]).astype(out_ref.dtype)


def wats_forward(adj, x, w, gfeat, w1, b1, w2, b2, *, tile_m=256, tile_k=512):
    """WATS forward: (A_norm @ (X @ W)) / (softplus(MLP(graph_features)) + 1e-6)."""
    N, F = x.shape
    C = w.shape[1]
    FG = gfeat.shape[1]
    HID = w1.shape[1]

    # Decoupled tiles: tile_m multiple of 128, tile_k multiple of tile_m (so n_pad
    # padded to tile_k is divisible by both).  Shrink for tiny graphs.
    tile_m = max(128, (min(tile_m, _round_up(N, 128)) // 128) * 128)
    tile_k = max(tile_m, (min(tile_k, _round_up(N, tile_m)) // tile_m) * tile_m)
    n_pad = _round_up(N, tile_k)

    c_pad = _round_up(C, 128)       # lane-dense output (no masked partial stores)
    f_pad = _round_up(F, 128)       # tile-aligned contraction for X @ W
    fg_pad = _round_up(FG, 128)
    h_pad = _round_up(HID, 128)

    f32, bf16 = jnp.float32, jnp.bfloat16
    # Zero padding is exact: padded rows/cols contribute nothing and are sliced off.
    adj_p = jnp.zeros((n_pad, n_pad), f32).at[:N, :N].set(adj).astype(bf16)
    x_p = jnp.zeros((n_pad, f_pad), f32).at[:N, :F].set(x).astype(bf16)
    w_p = jnp.zeros((f_pad, c_pad), f32).at[:F, :C].set(w).astype(bf16)
    # Calibration MLP stays f32 (tiny; rides in DMA slack, preserves calibration fidelity).
    gf_p = jnp.zeros((n_pad, fg_pad), f32).at[:N, :FG].set(gfeat)
    w1_p = jnp.zeros((fg_pad, h_pad), f32).at[:FG, :HID].set(w1)
    b1_p = jnp.zeros((1, h_pad), f32).at[0, :HID].set(b1)
    w2_p = jnp.zeros((1, h_pad), f32).at[0, :HID].set(w2)
    b2_p = jnp.asarray(b2, f32).reshape((1, 1))

    # ---------------- pass 1: H and inv_t (one sweep over node row-tiles) ----------------
    h_mat, inv_t = pl.pallas_call(
        wats_pre_kernel,
        out_shape=(jax.ShapeDtypeStruct((n_pad, c_pad), bf16),
                   jax.ShapeDtypeStruct((n_pad, 1), f32)),
        grid_spec=pltpu.PrefetchScalarGridSpec(
            num_scalar_prefetch=0,
            grid=(n_pad // tile_m,),
            in_specs=[
                pl.BlockSpec((tile_m, f_pad), lambda i: (i, 0)),    # X[i-tile]
                pl.BlockSpec((f_pad, c_pad), lambda i: (0, 0)),     # W (resident)
                pl.BlockSpec((tile_m, fg_pad), lambda i: (i, 0)),   # graph feats [i-tile]
                pl.BlockSpec((fg_pad, h_pad), lambda i: (0, 0)),    # MLP W1
                pl.BlockSpec((1, h_pad), lambda i: (0, 0)),         # MLP b1
                pl.BlockSpec((1, h_pad), lambda i: (0, 0)),         # MLP W2 (row)
                pl.BlockSpec((1, 1), lambda i: (0, 0)),             # MLP b2
            ],
            out_specs=[
                pl.BlockSpec((tile_m, c_pad), lambda i: (i, 0)),    # H (bf16)
                pl.BlockSpec((tile_m, 1), lambda i: (i, 0)),        # inv_t (f32)
            ],
        ),
        compiler_params=pltpu.CompilerParams(
            dimension_semantics=("parallel",)),
    )(x_p, w_p, gf_p, w1_p, b1_p, w2_p, b2_p)

    # ---------------- pass 2: out = (A @ H) * inv_t ----------------
    n_i = n_pad // tile_m
    n_k = n_pad // tile_k
    # A is the only streaming operand; 3-deep buffering keeps the DMA engine busy
    # across the k-boundary when the contraction has enough steps to pipeline.
    if n_k >= 3:
        a_spec = pl.BlockSpec((tile_m, tile_k), lambda i, k: (i, k),
                              pipeline_mode=pl.Buffered(3))
    else:
        a_spec = pl.BlockSpec((tile_m, tile_k), lambda i, k: (i, k))

    out = pl.pallas_call(
        wats_main_kernel,
        out_shape=jax.ShapeDtypeStruct((n_pad, c_pad), bf16),
        grid_spec=pltpu.PrefetchScalarGridSpec(
            num_scalar_prefetch=0,
            grid=(n_i, n_k),                                        # (rows, contraction)
            in_specs=[
                a_spec,                                             # A[i, k]
                pl.BlockSpec((tile_k, c_pad), lambda i, k: (k, 0)),  # H[k-tile]
                pl.BlockSpec((tile_m, 1), lambda i, k: (i, 0)),      # inv_t[i-tile]
            ],
            out_specs=pl.BlockSpec((tile_m, c_pad), lambda i, k: (i, 0)),
            scratch_shapes=[pltpu.VMEM((tile_m, c_pad), jnp.float32)],  # f32 accumulator
        ),
        compiler_params=pltpu.CompilerParams(
            dimension_semantics=("parallel", "arbitrary")),
    )(adj_p, h_mat, inv_t)

    return out[:N, :C].astype(jnp.float32)


def graph_wavelet_features(a_bin, k=4, s=0.4):
    """Plain-JAX dense stand-in for compute_graph_wavelet (init-time preprocessing,
    not part of the Pallas forward)."""
    n = a_bin.shape[0]
    deg = jnp.clip(jnp.sum(a_bin, axis=1), 1e-6, None)
    d_inv_sqrt = 1.0 / jnp.sqrt(deg)
    lap = jnp.eye(n, dtype=a_bin.dtype) - d_inv_sqrt[:, None] * a_bin * d_inv_sqrt[None, :]
    l_hat = lap - jnp.eye(n, dtype=a_bin.dtype)          # 2/lam_max * L - I, lam_max = 2
    x0 = jnp.log1p(deg)[:, None]
    feats = [x0, l_hat @ x0]
    for _ in range(2, k + 1):
        feats.append(2.0 * (l_hat @ feats[-1]) - feats[-2])
    f = jnp.concatenate(feats, axis=1)
    f = f * jnp.exp(-s * jnp.arange(k + 1, dtype=f.dtype))
    f = f / jnp.clip(jnp.sum(jnp.abs(f), axis=1, keepdims=True), 1e-12, None)
    return f


if __name__ == "__main__":
    key = jax.random.PRNGKey(0)
    k_x, k_w, k_a, k_w1, k_b1, k_w2 = jax.random.split(key, 6)

    N, F, C = 300, 32, 8      # nodes, input feature dim, classes
    FG, HID = 5, 16           # graph-wavelet dim (cheby k=4 -> 5), cal_hidden_dim

    x = jax.random.normal(k_x, (N, F), dtype=jnp.float32)
    w = jax.random.normal(k_w, (F, C), dtype=jnp.float32) * 0.1

    # Symmetric binary adjacency; row-normalized (with self loops) for the backbone.
    a_raw = (jax.random.uniform(k_a, (N, N)) > 0.95).astype(jnp.float32)
    a_bin = jnp.clip(a_raw + a_raw.T, 0.0, 1.0)
    a_self = a_bin + jnp.eye(N, dtype=jnp.float32)
    adj = a_self / jnp.sum(a_self, axis=1, keepdims=True)

    # WATS.init_graph_metrics: graph-wavelet node features (init-time preprocessing).
    gfeat = graph_wavelet_features(a_bin, k=FG - 1, s=0.4)

    # SimpleTempMLP parameters (fc1: FG->HID, fc2: HID->1).
    w1 = jax.random.normal(k_w1, (FG, HID), dtype=jnp.float32) * 0.5
    b1 = jax.random.normal(k_b1, (HID,), dtype=jnp.float32) * 0.1
    w2 = jax.random.normal(k_w2, (HID,), dtype=jnp.float32) * 0.5
    b2 = jnp.float32(0.2)

    out = wats_forward(adj, x, w, gfeat, w1, b1, w2, b2)
    out = jax.block_until_ready(out)

    # Plain-JAX reference mirroring the kernel's bf16 matmul operands / f32 accumulation,
    # f32 temperature MLP, and bf16 output store.
    f32, bf16 = jnp.float32, jnp.bfloat16
    a16, x16, w16 = adj.astype(bf16), x.astype(bf16), w.astype(bf16)
    h_ref = jnp.dot(x16, w16, preferred_element_type=f32).astype(bf16)
    logits_ref = jnp.dot(a16, h_ref, preferred_element_type=f32)
    h1_ref = jnp.maximum(
        jnp.dot(gfeat, w1, precision=jax.lax.Precision.HIGHEST) + b1[None, :], 0.0)
    z_ref = jnp.sum(h1_ref * w2[None, :], axis=-1, keepdims=True) + b2
    t_ref = jnp.maximum(z_ref, 0.0) + jnp.log1p(jnp.exp(-jnp.abs(z_ref)))
    ref = (logits_ref / (t_ref + 1e-6)).astype(bf16).astype(f32)

    assert out.shape == (N, C)
    max_err = float(jnp.max(jnp.abs(out - ref)))
    assert jnp.allclose(out, ref, atol=1e-2, rtol=1e-2), f"max abs err = {max_err}"

    print("KERNEL_OK")
</pallas_src>

<mosaic_0001>
module attributes {stable_mosaic.version = 11 : i64} {
  func.func @wats_pre_kernel(%arg0: i32, %arg1: memref<256x128xbf16, #tpu.memory_space<vmem>>, %arg2: memref<128x128xbf16, #tpu.memory_space<vmem>>, %arg3: memref<256x128xf32, #tpu.memory_space<vmem>>, %arg4: memref<128x128xf32, #tpu.memory_space<vmem>>, %arg5: memref<1x128xf32, #tpu.memory_space<vmem>>, %arg6: memref<1x128xf32, #tpu.memory_space<vmem>>, %arg7: memref<1x1xf32, #tpu.memory_space<vmem>>, %arg8: memref<256x128xbf16, #tpu.memory_space<vmem>>, %arg9: memref<256x1xf32, #tpu.memory_space<vmem>>) attributes {dimension_semantics = [#tpu.dimension_semantics<parallel>], iteration_bounds = array<i64: 2>, scalar_prefetch = 0 : i64, scratch_operands = 0 : i64, tpu.core_type = #tpu.core_type<tc>, window_params = [{transform_indices = @transform_0, window_bounds = array<i64: 256, 128>}, {pipeline_mode = #tpu.pipeline_mode<synchronous>, transform_indices = @transform_1, window_bounds = array<i64: 128, 128>}, {transform_indices = @transform_2, window_bounds = array<i64: 256, 128>}, {pipeline_mode = #tpu.pipeline_mode<synchronous>, transform_indices = @transform_3, window_bounds = array<i64: 128, 128>}, {pipeline_mode = #tpu.pipeline_mode<synchronous>, transform_indices = @transform_4, window_bounds = array<i64: 1, 128>}, {pipeline_mode = #tpu.pipeline_mode<synchronous>, transform_indices = @transform_5, window_bounds = array<i64: 1, 128>}, {pipeline_mode = #tpu.pipeline_mode<synchronous>, transform_indices = @transform_6, window_bounds = array<i64: 1, 1>}, {transform_indices = @transform_7, window_bounds = array<i64: 256, 128>}, {transform_indices = @transform_8, window_bounds = array<i64: 256, 1>}]} {
    %c0 = arith.constant 0 : index
    %c0_0 = arith.constant 0 : index
    %0 = vector.load %arg1[%c0, %c0_0] : memref<256x128xbf16, #tpu.memory_space<vmem>>, vector<256x128xbf16>
    %c0_1 = arith.constant 0 : index
    %c0_2 = arith.constant 0 : index
    %1 = vector.load %arg2[%c0_1, %c0_2] : memref<128x128xbf16, #tpu.memory_space<vmem>>, vector<128x128xbf16>
    %cst = arith.constant dense<0.000000e+00> : vector<256x128xf32>
    %2 = tpu.matmul %0, %1, %cst {dimension_numbers = #tpu.dot_dimension_numbers<[1], [0], [0], [1], [0, 0, 1, 1], [], []>} : vector<256x128xbf16>, vector<128x128xbf16>, vector<256x128xf32> -> vector<256x128xf32>
    %3 = arith.truncf %2 : vector<256x128xf32> to vector<256x128xbf16>
    %c0_3 = arith.constant 0 : index
    %c0_4 = arith.constant 0 : index
    %4 = vector.load %arg8[%c0_3, %c0_4] : memref<256x128xbf16, #tpu.memory_space<vmem>>, vector<256x128xbf16>
    tpu.vector_store %arg8[%c0_3, %c0_4], %3 {strides = array<i32>} : memref<256x128xbf16, #tpu.memory_space<vmem>>, vector<256x128xbf16>,
    %c0_5 = arith.constant 0 : index
    %c0_6 = arith.constant 0 : index
    %5 = vector.load %arg3[%c0_5, %c0_6] : memref<256x128xf32, #tpu.memory_space<vmem>>, vector<256x128xf32>
    %c0_7 = arith.constant 0 : index
    %c0_8 = arith.constant 0 : index
    %6 = vector.load %arg4[%c0_7, %c0_8] : memref<128x128xf32, #tpu.memory_space<vmem>>, vector<128x128xf32>
    %cst_9 = arith.constant dense<0.000000e+00> : vector<256x128xf32>
    %7 = tpu.matmul %5, %6, %cst_9 {dimension_numbers = #tpu.dot_dimension_numbers<[1], [0], [0], [1], [0, 0, 1, 1], [], []>} : vector<256x128xf32>, vector<128x128xf32>, vector<256x128xf32> -> vector<256x128xf32>
    %c0_10 = arith.constant 0 : index
    %c0_11 = arith.constant 0 : index
    %8 = vector.load %arg5[%c0_10, %c0_11] : memref<1x128xf32, #tpu.memory_space<vmem>>, vector<1x128xf32>
    %9 = vector.broadcast %8 : vector<1x128xf32> to vector<256x128xf32>
    %10 = arith.addf %7, %9 : vector<256x128xf32>
    %cst_12 = arith.constant 0.000000e+00 : f32
    %11 = vector.broadcast %cst_12 : f32 to vector<256x128xf32>
    %12 = arith.maximumf %10, %11 : vector<256x128xf32>
    %c0_13 = arith.constant 0 : index
    %c0_14 = arith.constant 0 : index
    %13 = vector.load %arg6[%c0_13, %c0_14] : memref<1x128xf32, #tpu.memory_space<vmem>>, vector<1x128xf32>
    %14 = vector.broadcast %13 : vector<1x128xf32> to vector<256x128xf32>
    %15 = arith.mulf %12, %14 : vector<256x128xf32>
    %cst_15 = arith.constant dense<0.000000e+00> : vector<256xf32>
    %16 = vector.multi_reduction <add>, %15, %cst_15 [1] : vector<256x128xf32> to vector<256xf32>
    %17 = vector.shape_cast %16 : vector<256xf32> to vector<256x1xf32>
    %c0_16 = arith.constant 0 : index
    %c0_17 = arith.constant 0 : index
    %18 = vector.load %arg7[%c0_16, %c0_17] : memref<1x1xf32, #tpu.memory_space<vmem>>, vector<1x1xf32>
    %19 = vector.broadcast %18 : vector<1x1xf32> to vector<256x1xf32>
    %20 = arith.addf %17, %19 : vector<256x1xf32>
    %cst_18 = arith.constant 0.000000e+00 : f32
    %21 = vector.broadcast %cst_18 : f32 to vector<256x1xf32>
    %22 = arith.maximumf %20, %21 : vector<256x1xf32>
    %23 = math.absf %20 : vector<256x1xf32>
    %cst_19 = arith.constant 0.000000e+00 : f32
    %24 = vector.broadcast %cst_19 : f32 to vector<256x1xf32>
    %25 = arith.subf %24, %23 : vector<256x1xf32>
    %26 = math.exp %25 : vector<256x1xf32>
    %27 = math.log1p %26 : vector<256x1xf32>
    %28 = arith.addf %22, %27 : vector<256x1xf32>
    %cst_20 = arith.constant 9.99999997E-7 : f32
    %29 = vector.broadcast %cst_20 : f32 to vector<256x1xf32>
    %30 = arith.addf %28, %29 : vector<256x1xf32>
    %31 = tpu.reciprocal %30 {approx = true} : vector<256x1xf32> -> vector<256x1xf32>
    %c0_21 = arith.constant 0 : index
    %c0_22 = arith.constant 0 : index
    %32 = vector.load %arg9[%c0_21, %c0_22] : memref<256x1xf32, #tpu.memory_space<vmem>>, vector<256x1xf32>
    tpu.vector_store %arg9[%c0_21, %c0_22], %31 {strides = array<i32>} : memref<256x1xf32, #tpu.memory_space<vmem>>, vector<256x1xf32>,
    return
  }
  func.func @transform_0(%arg0: i32) -> (i32, i32) {
    %c0_i32 = arith.constant 0 : i32
    %c0_i32_0 = arith.constant 0 : i32
    return %arg0, %c0_i32 : i32, i32
  }
  func.func @transform_1(%arg0: i32) -> (i32, i32) {
    %c0_i32 = arith.constant 0 : i32
    %c0_i32_0 = arith.constant 0 : i32
    %c0_i32_1 = arith.constant 0 : i32
    return %c0_i32, %c0_i32_0 : i32, i32
  }
  func.func @transform_2(%arg0: i32) -> (i32, i32) {
    %c0_i32 = arith.constant 0 : i32
    %c0_i32_0 = arith.constant 0 : i32
    return %arg0, %c0_i32 : i32, i32
  }
  func.func @transform_3(%arg0: i32) -> (i32, i32) {
    %c0_i32 = arith.constant 0 : i32
    %c0_i32_0 = arith.constant 0 : i32
    %c0_i32_1 = arith.constant 0 : i32
    return %c0_i32, %c0_i32_0 : i32, i32
  }
  func.func @transform_4(%arg0: i32) -> (i32, i32) {
    %c0_i32 = arith.constant 0 : i32
    %c0_i32_0 = arith.constant 0 : i32
    %c0_i32_1 = arith.constant 0 : i32
    return %c0_i32, %c0_i32_0 : i32, i32
  }
  func.func @transform_5(%arg0: i32) -> (i32, i32) {
    %c0_i32 = arith.constant 0 : i32
    %c0_i32_0 = arith.constant 0 : i32
    %c0_i32_1 = arith.constant 0 : i32
    return %c0_i32, %c0_i32_0 : i32, i32
  }
  func.func @transform_6(%arg0: i32) -> (i32, i32) {
    %c0_i32 = arith.constant 0 : i32
    %c0_i32_0 = arith.constant 0 : i32
    %c0_i32_1 = arith.constant 0 : i32
    return %c0_i32, %c0_i32_0 : i32, i32
  }
  func.func @transform_7(%arg0: i32) -> (i32, i32) {
    %c0_i32 = arith.constant 0 : i32
    %c0_i32_0 = arith.constant 0 : i32
    return %arg0, %c0_i32 : i32, i32
  }
  func.func @transform_8(%arg0: i32) -> (i32, i32) {
    %c0_i32 = arith.constant 0 : i32
    %c0_i32_0 = arith.constant 0 : i32
    return %arg0, %c0_i32 : i32, i32
  }
}

</mosaic_0001>

<bundles_post_ra>
// kernel: tpu_custom_call.1
= control target key start
LH: loop header
LB: loop body
LE: loop exit
PB: predicated region body
PF: predicated region fallthrough
CT: control target
= control target key end

     0   :  { %s4055_s0 = inlined_call_operand.hbm [shape: bf16[512,128], index: 0, kind: input, shape index: {}]   ;;  %s4056_s1 = inlined_call_operand.hbm [shape: bf16[128,128], index: 1, kind: input, shape index: {}]   ;;  %s4057_s2 = inlined_call_operand.hbm [shape: f32[512,128], index: 2, kind: input, shape index: {}]   ;;  %s4058_s3 = inlined_call_operand.hbm [shape: f32[128,128], index: 3, kind: input, shape index: {}]   ;;  %s4059_s4 = inlined_call_operand.vmem [shape: f32[1,128], index: 4, kind: input, shape index: {}]   ;;  %s4060_s5 = inlined_call_operand.vmem [shape: f32[1,128], index: 5, kind: input, shape index: {}]   ;;  %s4061_s6 = inlined_call_operand.<no memory space> [shape: f32[1,1], index: 6, kind: input, shape index: {}]   ;;  %s4062_s7 = inlined_call_operand.hbm [shape: bf16[512,128], index: 7, kind: output, shape index: {0}]   ;;  %s4063_s8 = inlined_call_operand.vmem [shape: f32[512,1], index: 8, kind: output, shape index: {1}]  }
   0x1   :  { %4074 = sst [smem:[#allocation18_spill]] %s4055_s0  ;;  %v14_v0 = vstv %s4061_s6 }
   0x2   :  { %15 = vst [vmem:[#allocation2] sm:$0x1] %v14_v0 }
   0x3   :  { %16 = vsyncpa [#allocation4], 0 }
   0x4   :  { %18 = vsyncpa [#allocation4 + $0x1], 0 }
   0x5   :  { %19 = vsyncpa [#allocation7], 0 }
   0x6   :  { %20 = vsyncpa [#allocation5], 0 }
   0x7   :  { %22 = vsyncpa [#allocation5 + $0x1], 0  ;;  %s3067_s29 = smov 0   ;;  %s3069_s30 = smov 0  }
   0x8   :  { %s3071_s9 = smov 0   ;;  %s3073_s10 = smov 0  }
   0x9 LB: > { %s3088_s6 = sadd.s32 4294967295, %s3006_s10   ;;  %s2114_s11 = sadd.s32 4294967294, %s3006_s10   ;;  %s3006_s10 = sphi %s3073_s10, %s4140_s10   ;;  %s3002_s9 = sphi %s3071_s9, %s4143_s9   ;;  %s2998_s30 = sphi %s3069_s30, %s4142_s30   ;;  %s2994_s29 = sphi %s3067_s29, %s4141_s29  }
   0xa   : > { %p48_p0 = scmp.ne.s32.totalorder %s2998_s30, %s2994_s29  ;;  %p4069_p1 = scmp.eq.s32.totalorder %s3088_s6, 0 }
   0xb   : > { %p203_p2 = scmp.eq.s32.totalorder %s3088_s6, 1  ;;  %p209_p3 = scmp.eq.s32.totalorder %s2114_s11, 1 }
   0xc   : > { %p3097_p4 = por %p4069_p1, %p48_p0  ;;  %p2115_p5 = scmp.ge.s32.totalorder %s3006_s10, 1 }
   0xd   : > { %p3102_p6 = por %p209_p3, %p48_p0  ;;  %p242_p7 = scmp.lt.s32.totalorder %s3006_s10, 3 }
   0xe   : > { %s4075_s12 = scalar_select %p3097_p4, 1, 0 }
   0xf   : > { %s4076_s13 = scalar_select %p3102_p6, 1, 0 }
  0x10   : > { %p3107_p8 = pnand %p2115_p5, %p242_p7  ;;  %s3008_s15 = smov [#allocation6]  }
  0x11   : > { %4077 = sst [smem:[#allocation16_spill]] %s4076_s13  ;;  %s254_s16 = sshll.u32 %s3008_s15, 4  ;;  %s255_s16 = int_to_ptr.vmem [resolvable:$true] %s254_s16 }
  0x12   : > { %s4078_s14 = scalar_select %p3107_p8, 1, 0 }
  0x13   : > { %p2541_p9 = pneg %p3107_p8  ;;  %s3121_s18 = sadd.s32 1, %s3006_s10  }
  0x14   : > { %4080 = sst [smem:[#allocation17_spill]] %s3121_s18  ;;  %s35_s19 = sadd.s32 1, %s3002_s9 }
  0x15   : > { %p3116_p11 = pnand %p2541_p9, %p4069_p1  ;;  %s32_s20 = ssub.s32 %s3006_s10, %s3121_s18 }
  0x16   : > { %s2833_s21 = scalar_lea.vmem %s255_s16, 1024  ;;  %p2841_p5 = scmp.lt.s32.totalorder %s255_s16, %s255_s16 }
  0x17   : > { %p4070_p12 = pneg %p3116_p11  ;;  %p2834_p13 = scmp.ne.s32.totalorder %s255_s16, %s2833_s21 }
  0x18   : > { %p2842_p7 = scmp.lt.s32.totalorder %s2833_s21, %s2833_s21 }
  0x19   : > { %p2836_p0 = pnand %p2834_p13, %p4070_p12 }
  0x1a   : > { %p2843_p9 = por %p2842_p7, %p2841_p5 }
  0x1b   : > { %p2837_p3 = pneg %p2836_p0 }
  0x1d   : > { %p2844_p10 = pnand %p2843_p9, %p2837_p3 }
  0x1f   : > { %2847 = shalt.err (!%p2844_p10)
}
  0x20   : > { %s4067_s22 = smov 64   ;;  %s4068_s23 = smov 4  }
  0x21   : > { %2544 = dma.hbm_to_vmem [thread:$0]  (!%p3116_p11), %s4056_s1, 1024, %s255_s16, [#allocation7], %s4067_s22, %s4067_s22, %s4068_s23  }
  0x22   : > { %p33_p10 = scmp.eq.s32.totalorder %s32_s20, 0  ;;  %p42_p13 = scmp.ne.s32.totalorder %s3002_s9, %s2998_s30 }
  0x23   : > { %p43_p0 = scmp.eq.s32.totalorder %s3006_s10, 0  ;;  %p2561_p3 = scmp.lt.s32.totalorder %s3006_s10, 2 }
  0x24   : > { %s3144_s26 = scalar_select %p33_p10, %s3002_s9, %s35_s19  }
  0x25   : > { %p44_p5 = por %p43_p0, %p42_p13  ;;  %p3148_p7 = por %p203_p2, %p42_p13 }
  0x26   : > { %s290_s28 = sand.u32 1, %s3006_s10   ;;  %s292_s11 = sand.u32 1, %s3002_s9  }
  0x27   : > { %s4081_s27 = scalar_select %p3148_p7, 1, 0 }
  0x28   : > { %s2119_s15 = sshll.u32 %s292_s11, 7  ;;  %s2197_s21 = sshll.u32 %s3006_s10, 11 }
  0x29   : > { %s4082_s0 = sld [smem:[#allocation18_spill]]  ;;  %s294_s19 = scalar_lea.vmem [#allocation3], %s2119_s15 }
  0x2a   : > { %s301_s20 = sshll.u32 %s294_s19, 4  ;;  %p3162_p2 = pnand %p2561_p3, %p44_p5  ;;  %s3160_s20 = int_to_ptr.vmem [resolvable:$true] %s301_s20 }
  0x2b   : > { %s3166_s25 = sshll.u32 %s292_s11, 8  ;;  %s3168_s22 = scalar_lea.sflag [#allocation4], %s290_s28 }
  0x2c   : > { %p2850_p10 = pneg %p3162_p2 }
  0x2f   : > { %s3158_s16 = scalar_lea.hbm %s4082_s0, %s2197_s21  ;;  %s2853_s21 = scalar_lea.hbm %s4082_s0, 4096 }
  0x30   : > { %s2848_s13 = scalar_lea.hbm %s3158_s16, 2048  ;;  %p2854_p3 = scmp.lt.s32.totalorder %s3158_s16, %s4082_s0 }
  0x31   : > { %p2849_p9 = scmp.ne.s32.totalorder %s3158_s16, %s2848_s13  ;;  %p2855_p5 = scmp.lt.s32.totalorder %s2853_s21, %s2848_s13 }
  0x33   : > { %p2851_p13 = pnand %p2850_p10, %p2849_p9  ;;  %p2856_p1 = por %p2855_p5, %p2854_p3 }
  0x35   : > { %p2852_p0 = pneg %p2851_p13 }
  0x37   : > { %p2857_p12 = pnand %p2856_p1, %p2852_p0 }
  0x39   : > { %2860 = shalt.err (!%p2857_p12)
}
  0x3a   : > { %s2861_s28 = scalar_lea.vmem %s3160_s20, 2048  ;;  %s3011_s11 = smov [#allocation3]  }
  0x3b   : > { %p2862_p6 = scmp.ne.s32.totalorder %s3160_s20, %s2861_s28  ;;  %s2866_s18 = sshll.u32 %s3011_s11, 4  ;;  %s2867_s18 = int_to_ptr.vmem [resolvable:$false] %s2866_s18 }
  0x3c   : > { %s2868_s15 = scalar_lea.vmem %s2867_s18, 4096  ;;  %p2869_p7 = scmp.lt.s32.totalorder %s3160_s20, %s2867_s18 }
  0x3d   : > { %p2864_p9 = pnand %p2862_p6, %p2850_p10  ;;  %p2870_p4 = scmp.lt.s32.totalorder %s2868_s15, %s2861_s28 }
  0x3f   : > { %p2865_p13 = pneg %p2864_p9  ;;  %p2871_p8 = por %p2870_p4, %p2869_p7 }
  0x41   : > { %p2872_p3 = pnand %p2871_p8, %p2865_p13 }
  0x43   : > { %2875 = shalt.err (!%p2872_p3)
}
  0x44   : > { %s4084_s23 = smov 4   ;;  %s4085_s13 = smov 64  }
  0x45   : > { %2551 = dma.hbm_to_vmem [thread:$0]  (!%p3162_p2), %s3158_s16, 2048, %s3160_s20, %s3168_s22, %s4085_s13, %s4085_s13, %s4084_s23  }
  0x46   : > { %s315_s21 = scalar_lea.vmem [#allocation8], %s3166_s25  ;;  %s3012_s11 = smov [#allocation9]  }
  0x47   : > { %s322_s19 = sshll.u32 %s315_s21, 4  ;;  %s267_s18 = sshll.u32 %s3012_s11, 4  ;;  %s268_s18 = int_to_ptr.vmem [resolvable:$true] %s267_s18  ;;  %s323_s19 = int_to_ptr.vmem [resolvable:$true] %s322_s19 }
  0x48   : > { %s2198_s28 = sshll.u32 %s3006_s10, 12  ;;  %s2887_s15 = scalar_lea.vmem %s268_s18, 2048 }
  0x49   : > { %p2888_p1 = scmp.ne.s32.totalorder %s268_s18, %s2887_s15  ;;  %p4086_p4 = pneg %p3116_p11 }
  0x4a   : > { %p2895_p12 = scmp.lt.s32.totalorder %s268_s18, %s268_s18  ;;  %p2896_p7 = scmp.lt.s32.totalorder %s2887_s15, %s2887_s15 }
  0x4b   : > { %p2890_p6 = pnand %p2888_p1, %p4086_p4 }
  0x4c   : > { %p2897_p0 = por %p2896_p7, %p2895_p12 }
  0x4d   : > { %p2891_p8 = pneg %p2890_p6 }
  0x4f   : > { %p2898_p5 = pnand %p2897_p0, %p2891_p8 }
  0x51   : > { %2901 = shalt.err (!%p2898_p5)
}
  0x52   : > { %s3013_s0 = smov 128   ;;  %s3014_s16 = smov 8  }
  0x53   : > { %2547 = dma.hbm_to_vmem [thread:$0]  (!%p3116_p11), %s4058_s3, 2048, %s268_s18, [#allocation7], %s3013_s0, %s3013_s0, %s3014_s16  }
  0x54   : > { %s3214_s21 = scalar_lea.hbm %s4057_s2, %s2198_s28  ;;  %s2907_s20 = scalar_lea.hbm %s4057_s2, 8192 }
  0x55   : > { %s2902_s11 = scalar_lea.hbm %s3214_s21, 4096  ;;  %p2908_p11 = scmp.lt.s32.totalorder %s3214_s21, %s4057_s2 }
  0x56   : > { %p2903_p9 = scmp.ne.s32.totalorder %s3214_s21, %s2902_s11  ;;  %p2909_p1 = scmp.lt.s32.totalorder %s2907_s20, %s2902_s11 }
  0x58   : > { %p2905_p13 = pnand %p2903_p9, %p2850_p10  ;;  %p2910_p4 = por %p2909_p1, %p2908_p11 }
  0x5a   : > { %p2906_p3 = pneg %p2905_p13 }
  0x5c   : > { %p2911_p6 = pnand %p2910_p4, %p2906_p3 }
  0x5e   : > { %2914 = shalt.err (!%p2911_p6)
}
  0x5f   : > { %s2915_s28 = scalar_lea.vmem %s323_s19, 4096  ;;  %s3015_s23 = smov [#allocation8]  }
  0x60   : > { %p2916_p8 = scmp.ne.s32.totalorder %s323_s19, %s2915_s28  ;;  %s2920_s13 = sshll.u32 %s3015_s23, 4  ;;  %s2921_s13 = int_to_ptr.vmem [resolvable:$false] %s2920_s13 }
  0x61   : > { %s2922_s17 = scalar_lea.vmem %s2921_s13, 8192  ;;  %p2923_p0 = scmp.lt.s32.totalorder %s323_s19, %s2921_s13 }
  0x62   : > { %p2918_p12 = pnand %p2916_p8, %p2850_p10  ;;  %p2924_p5 = scmp.lt.s32.totalorder %s2922_s17, %s2915_s28 }
  0x64   : > { %p2919_p7 = pneg %p2918_p12  ;;  %p2925_p9 = por %p2924_p5, %p2923_p0 }
  0x66   : > { %p2926_p13 = pnand %p2925_p9, %p2919_p7 }
  0x68   : > { %2929 = shalt.err (!%p2926_p13)
}
  0x69   : > { %2554 = dma.hbm_to_vmem [thread:$0]  (!%p3162_p2), %s3214_s21, 4096, %s323_s19, %s3168_s22, %s3013_s0, %s3013_s0, %s3014_s16  }
  0x6a   : > { %p4087_p10 = scmp.ne.s32.totalorder %s4078_s14, 0 }
  0x6b   : > { %s336_s11 = sand.u32 (!%p4087_p10), 1, %s3088_s6   ;;  %s3242_s15 = sand.u32 (!%p4087_p10), 1, %s2998_s30  }
  0x6c   : > { %334 = sbr.rel (%p4087_p10) target bundleno = 691 (0x2b3), region = 48  ;;  %s2126_s20 = sshll.u32 (!%p4087_p10), %s3242_s15, 7 }
  0x6d   : > { %s337_s18 = scalar_lea.sflag (!%p4087_p10), [#allocation4], %s336_s11  ;;  %s3247_s24 = scalar_lea.vmem (!%p4087_p10), [#allocation3], %s2126_s20 }
  0x6e   : > { %p4088_p3 = scmp.ne.s32.totalorder (!%p4087_p10), %s4075_s12, 0 }
  0x71   : > { %2973 = dma.done.wait (%p4088_p3), %s337_s18, 2048  }
  0x72   : > { %2975 = vsyncadd (%p4088_p3), %s337_s18, 4294965248  ;;  %p4089_p2 = scmp.eq.s32.totalorder %s3088_s6, 0 }
  0x74   : > { %2977 = dma.done.wait (%p4089_p2), [#allocation7], 1024   ;;  %p4090_p11 = pmov %p4089_p2 }
  0x75   : > { %s2128_s0 = sshll.u32 %s3242_s15, 8 }
  0x76   : > { %2979 = vsyncadd (%p4090_p11), [#allocation7], 4294966272  ;;  %s3258_s14 = scalar_lea.vmem [#allocation8], %s2128_s0 }
  0x77   : > { %2981 = dma.done.wait (%p4088_p3), %s337_s18, 4096  }
  0x78   : > { %2983 = vsyncadd (%p4088_p3), %s337_s18, 4294963200  ;;  %p4091_p1 = pmov %p4089_p2 }
  0x7a   : > { %2985 = dma.done.wait (%p4091_p1), [#allocation7], 2048   ;;  %p4092_p4 = pmov %p4091_p1 }
  0x7b   : > { %v970_v1 = vld [vmem:[#allocation9 + $0x78] sm:$0xff]  ;;  %v969_v2 = vld [vmem:[#allocation9 + $0x70] sm:$0xff]  ;;  %v968_v3 = vld [vmem:[#allocation9 + $0x68] sm:$0xff]  ;;  %s3392_s21 = scalar_lea.vmem [#allocation10], %s2126_s20  ;;  %s2131_s25 = sshll.u32 %s3088_s6, 5  ;;  %vm1921_vm7 = vcmask 7168  }
  0x7c   : > { %2987 = vsyncadd (%p4092_p4), [#allocation7], 4294965248  ;;  %2447 = vmatprep.subr.mxu1 %v970_v1  ;;  %v967_v4 = vld [vmem:[#allocation9 + $0x60] sm:$0xff]  ;;  %v966_v6 = vld [vmem:[#allocation9 + $0x58] sm:$0xff]  ;;  %p3516_p6 = scmp.lt.s32.totalorder %s2131_s25, 63  ;;  %s2231_s20 = sshll.u32 %s3088_s6, 11 }
  0x7d   : > { %2448 = vmatpush3.msra.mxu1 %v970_v1  ;;  %v923_v5 = vld [vmem:[%s3258_s14] sm:$0xff]  ;;  %v965_v7 = vld [vmem:[#allocation9 + $0x50] sm:$0xff]  ;;  %v964_v8 = vld [vmem:[#allocation9 + $0x48] sm:$0xff]  ;;  %s1973_s18 = sshll.u32 %s3392_s21, 4  ;;  %s3925_s0 = scalar_lea.hbm %s4062_s7, %s2231_s20  ;;  %s3927_s18 = int_to_ptr.vmem [resolvable:$true] %s1973_s18 }
  0x7e   : > { %2449 = vmatprep.subr.mxu1 %v969_v2  ;;  %2479 = vmatprep.mubr.f32.mxu1 %v923_v5  ;;  %v963_v9 = vld [vmem:[#allocation9 + $0x40] sm:$0xff]  ;;  %v962_v10 = vld [vmem:[#allocation9 + $0x38] sm:$0xff]  ;;  %v961_v11 = vld [vmem:[#allocation9 + $0x30] sm:$0xff]  ;;  %s4145_s25 = smov (!%p3516_p6, %s2131_s25), 63  ;;  %s2930_s12 = scalar_lea.vmem %s3927_s18, 2048 }
  0x7f   : > { %2450 = vmatpush3.msra.mxu1 %v969_v2  ;;  %v2605_v12 = vld [vmem:[#allocation6 + $0x38] sm:$0xff]   ;;  %v2606_v13 = vld [vmem:[#allocation6 + $0x30] sm:$0xff]   ;;  %v960_v14 = vld [vmem:[#allocation9 + $0x28] sm:$0xff]  ;;  %s2132_s23 = sshll.u32 %s4145_s25, 3  ;;  %p2931_p8 = scmp.ne.s32.totalorder %s3927_s18, %s2930_s12 }
  0x80   : > { %2451 = vmatprep.subr.mxu1 %v968_v3  ;;  %2399 = vmatprep.subr.bf16.mxu0 %v2605_v12  ;;  %v959_v15 = vld [vmem:[#allocation9 + $0x20] sm:$0xff]  ;;  %v2607_v16 = vld [vmem:[#allocation6 + $0x28] sm:$0xff]   ;;  %v958_v17 = vld [vmem:[#allocation9 + $0x18] sm:$0xff]  ;;  %s3575_s11 = scalar_lea.vmem %s4063_s8, %s2132_s23  ;;  %p4136_p12 = scmp.ne.s32.totalorder %s4081_s27, 0 }
  0x81   : > { %2452 = vmatpush3.msra.mxu1 %v968_v3  ;;  %2400 = vmatpush3.bf16.msra.mxu0 %v2605_v12  ;;  %v957_v18 = vld [vmem:[#allocation9 + $0x10] sm:$0xff]  ;;  %v2608_v19 = vld [vmem:[#allocation6 + $0x20] sm:$0xff]   ;;  %v956_v20 = vld [vmem:[#allocation9 + $0x8] sm:$0xff]  ;;  %s3016_s22 = smov [#allocation10]  }
  0x82   : > { %2453 = vmatprep.subr.mxu1 %v967_v4  ;;  %2401 = vmatprep.subr.bf16.mxu0 %v2606_v13  ;;  %v955_v21 = vld [vmem:[#allocation9] sm:$0xff]  ;;  %v2609_v22 = vld [vmem:[#allocation6 + $0x18] sm:$0xff]   ;;  %v924_v23 = vld [vmem:[%s3258_s14 + $0x8] sm:$0xff]  ;;  %p2932_p7 = pnand %p2931_p8, %p4136_p12  ;;  %s2934_s19 = sshll.u32 %s3016_s22, 4  ;;  %s2935_s19 = int_to_ptr.vmem [resolvable:$false] %s2934_s19 }
  0x83   : > { %2454 = vmatpush3.msra.mxu1 %v967_v4  ;;  %v925_v24 = vld [vmem:[%s3258_s14 + $0x10] sm:$0xff]  ;;  %v926_v26 = vld [vmem:[%s3258_s14 + $0x18] sm:$0xff]  ;;  %v927_v27 = vld [vmem:[%s3258_s14 + $0x20] sm:$0xff]  ;;  %s2936_s16 = scalar_lea.vmem %s2935_s19, 4096  ;;  %p2937_p5 = scmp.lt.s32.totalorder %s3927_s18, %s2935_s19 }
  0x84   : > { %2455 = vmatprep.subr.mxu1 %v966_v6  ;;  %v2610_v25 = vld [vmem:[#allocation6 + $0x10] sm:$0xff]   ;;  %v2611_v28 = vld [vmem:[#allocation6 + $0x8] sm:$0xff]   ;;  %v2612_v31 = vld [vmem:[#allocation6] sm:$0xff]   ;;  %p2933_p0 = pneg %p2932_p7  ;;  %p2938_p9 = scmp.lt.s32.totalorder %s2936_s16, %s2930_s12 }
  0x85   : > { %2456 = vmatpush3.msra.mxu1 %v966_v6  ;;  %2402 = vmatpush3.bf16.msra.mxu0 %v2606_v13  ;;  %v928_v29 = vld [vmem:[%s3258_s14 + $0x28] sm:$0xff]  ;;  %v929_v30 = vld [vmem:[%s3258_s14 + $0x30] sm:$0xff]  ;;  %v930_v32 = vld [vmem:[%s3258_s14 + $0x38] sm:$0xff] }
  0x86   : > { %2457 = vmatprep.subr.mxu1 %v965_v7  ;;  %2403 = vmatprep.subr.bf16.mxu0 %v2607_v16  ;;  %v931_v33 = vld [vmem:[%s3258_s14 + $0x40] sm:$0xff]  ;;  %v932_v34 = vld [vmem:[%s3258_s14 + $0x48] sm:$0xff]  ;;  %v933_v35 = vld [vmem:[%s3258_s14 + $0x50] sm:$0xff]  ;;  %p2939_p13 = por %p2938_p9, %p2937_p5 }
  0x87   : > { %2458 = vmatpush3.msra.mxu1 %v965_v7  ;;  %v934_v36 = vld [vmem:[%s3258_s14 + $0x58] sm:$0xff]  ;;  %v935_v37 = vld [vmem:[%s3258_s14 + $0x60] sm:$0xff]  ;;  %v936_v38 = vld [vmem:[%s3258_s14 + $0x68] sm:$0xff] }
  0x88   : > { %2459 = vmatprep.subr.mxu1 %v964_v8  ;;  %v937_v39 = vld [vmem:[%s3258_s14 + $0x70] sm:$0xff]  ;;  %v938_v40 = vld [vmem:[%s3258_s14 + $0x78] sm:$0xff]  ;;  %v939_v41 = vld [vmem:[%s3258_s14 + $0x80] sm:$0xff]  ;;  %p2940_p10 = pnand %p2939_p13, %p2933_p0 }
  0x89   : > { %2460 = vmatpush3.msra.mxu1 %v964_v8  ;;  %2404 = vmatpush3.bf16.msra.mxu0 %v2607_v16  ;;  %v940_v42 = vld [vmem:[%s3258_s14 + $0x88] sm:$0xff]  ;;  %v941_v43 = vld [vmem:[%s3258_s14 + $0x90] sm:$0xff]  ;;  %v942_v44 = vld [vmem:[%s3258_s14 + $0x98] sm:$0xff] }
  0x8a   : > { %2461 = vmatprep.subr.mxu1 %v963_v9  ;;  %2405 = vmatprep.subr.bf16.mxu0 %v2608_v19  ;;  %v943_v45 = vld [vmem:[%s3258_s14 + $0xa0] sm:$0xff]  ;;  %v944_v46 = vld [vmem:[%s3258_s14 + $0xa8] sm:$0xff]  ;;  %v945_v47 = vld [vmem:[%s3258_s14 + $0xb0] sm:$0xff] }
  0x8b   : > { %2462 = vmatpush3.msra.mxu1 %v963_v9  ;;  %v946_v48 = vld [vmem:[%s3258_s14 + $0xb8] sm:$0xff]  ;;  %v947_v49 = vld [vmem:[%s3258_s14 + $0xc0] sm:$0xff]  ;;  %v948_v50 = vld [vmem:[%s3258_s14 + $0xc8] sm:$0xff] }
  0x8c   : > { %2463 = vmatprep.subr.mxu1 %v962_v10  ;;  %v949_v51 = vld [vmem:[%s3258_s14 + $0xd0] sm:$0xff]  ;;  %v950_v52 = vld [vmem:[%s3258_s14 + $0xd8] sm:$0xff]  ;;  %v951_v53 = vld [vmem:[%s3258_s14 + $0xe0] sm:$0xff] }
  0x8d   : > { %2464 = vmatpush3.msra.mxu1 %v962_v10  ;;  %2406 = vmatpush3.bf16.msra.mxu0 %v2608_v19  ;;  %v952_v54 = vld [vmem:[%s3258_s14 + $0xe8] sm:$0xff]  ;;  %v953_v55 = vld [vmem:[%s3258_s14 + $0xf0] sm:$0xff]  ;;  %v954_v56 = vld [vmem:[%s3258_s14 + $0xf8] sm:$0xff]  ;;  %s1955_s14 = scalar_lea.sflag [#allocation5], %s3242_s15 }
  0x8e   : > { %2465 = vmatprep.subr.mxu1 %v961_v11  ;;  %2407 = vmatprep.subr.bf16.mxu0 %v2609_v22  ;;  %v2613_v57 = vld [vmem:[%s3247_s24] sm:$0xff]   ;;  %v2614_v58 = vld [vmem:[%s3247_s24 + $0x8] sm:$0xff]   ;;  %v2615_v59 = vld [vmem:[%s3247_s24 + $0x10] sm:$0xff]  }
  0x8f   : > { %2466 = vmatpush3.msra.mxu1 %v961_v11  ;;  %2415 = vmatprep.mubr.bf16.mxu0 %v2613_v57  ;;  %v2616_v60 = vld [vmem:[%s3247_s24 + $0x18] sm:$0xff]   ;;  %v2617_v61 = vld [vmem:[%s3247_s24 + $0x20] sm:$0xff]   ;;  %v2618_v62 = vld [vmem:[%s3247_s24 + $0x28] sm:$0xff]  }
  0x90   : > { %2467 = vmatprep.subr.mxu1 %v960_v14  ;;  %v2619_v63 = vld [vmem:[%s3247_s24 + $0x30] sm:$0xff]   ;;  %v2620_v0 = vld [vmem:[%s3247_s24 + $0x38] sm:$0xff]   ;;  %v2621_v1 = vld [vmem:[%s3247_s24 + $0x40] sm:$0xff]  }
  0x91   : > { %2468 = vmatpush3.msra.mxu1 %v960_v14  ;;  %2408 = vmatpush3.bf16.msra.mxu0 %v2609_v22  ;;  %v2622_v2 = vld [vmem:[%s3247_s24 + $0x48] sm:$0xff]   ;;  %v2623_v3 = vld [vmem:[%s3247_s24 + $0x50] sm:$0xff]   ;;  %v2624_v4 = vld [vmem:[%s3247_s24 + $0x58] sm:$0xff]  }
  0x92   : > { %2469 = vmatprep.subr.mxu1 %v959_v15  ;;  %2409 = vmatprep.subr.bf16.mxu0 %v2610_v25  ;;  %v2625_v5 = vld [vmem:[%s3247_s24 + $0x60] sm:$0xff]   ;;  %v2626_v6 = vld [vmem:[%s3247_s24 + $0x68] sm:$0xff]   ;;  %v2627_v7 = vld [vmem:[%s3247_s24 + $0x70] sm:$0xff]  }
  0x93   : > { %2470 = vmatpush3.msra.mxu1 %v959_v15  ;;  %v2628_v8 = vld [vmem:[%s3247_s24 + $0x78] sm:$0xff]  }
  0x94   : > { %2471 = vmatprep.subr.mxu1 %v958_v17  ;;  %v3319_v9 = vld [vmem:[%s4059_s4] ss:$0 sm:$0xff] }
  0x95   : > { %2472 = vmatpush3.msra.mxu1 %v958_v17  ;;  %2410 = vmatpush3.bf16.msra.mxu0 %v2610_v25  ;;  %v3325_v13 = vld [vmem:[%s4060_s5] ss:$0 sm:$0xff] }
  0x96   : > { %2473 = vmatprep.subr.mxu1 %v957_v18  ;;  %2411 = vmatprep.subr.bf16.mxu0 %v2611_v28 }
  0x97   : > { %2474 = vmatpush3.msra.mxu1 %v957_v18 }
  0x98   : > { %2475 = vmatprep.subr.mxu1 %v956_v20 }
  0x99   : > { %2476 = vmatpush3.msra.mxu1 %v956_v20  ;;  %2412 = vmatpush3.bf16.msra.mxu0 %v2611_v28 }
  0x9a   : > { %2477 = vmatprep.subr.mxu1 %v955_v21  ;;  %2413 = vmatprep.subr.bf16.mxu0 %v2612_v31 }
  0x9b   : > { %2478 = vmatpush3.msra.mxu1 %v955_v21 }
  0x9c   : > { %2480 = vmatmul.mubr.f32.vlgmr.msra.gmra.mxu1 %v924_v23 }
  0x9d   : > { %2482 = vmatprep.mubr.f32.mxu1 %v925_v24  ;;  %2414 = vmatpush3.bf16.msra.mxu0 %v2612_v31 }
  0xa0   : > { %2483 = vmatmul.mubr.f32.gmra.mxu1 %v926_v26  ;;  %2416 = vmatmul.mubr.bf16.vlgmr.msra.gmra.mxu0 %v2614_v58 }
  0xa1   : > { %2485 = vmatprep.mubr.f32.mxu1 %v927_v27  ;;  %2419 = vmatprep.mubr.bf16.mxu0 %v2615_v59 }
  0xa4   : > { %2486 = vmatmul.mubr.f32.gmra.mxu1 %v928_v29 }
  0xa5   : > { %2488 = vmatprep.mubr.f32.mxu1 %v929_v30 }
  0xa8   : > { %2489 = vmatmul.mubr.f32.gmra.mxu1 %v930_v32  ;;  %2420 = vmatmul.mubr.bf16.gmra.mxu0 %v2616_v60 }
  0xa9   : > { %2491 = vmatprep.mubr.f32.mxu1 %v931_v33  ;;  %2423 = vmatprep.mubr.bf16.mxu0 %v2617_v61 }
  0xac   : > { %2492 = vmatmul.mubr.f32.gmra.mxu1 %v932_v34 }
  0xad   : > { %2494 = vmatprep.mubr.f32.mxu1 %v933_v35 }
  0xb0   : > { %2495 = vmatmul.mubr.f32.gmra.mxu1 %v934_v36  ;;  %2424 = vmatmul.mubr.bf16.gmra.mxu0 %v2618_v62 }
  0xb1   : > { %2497 = vmatprep.mubr.f32.mxu1 %v935_v37  ;;  %2427 = vmatprep.mubr.bf16.mxu0 %v2619_v63 }
  0xb4   : > { %2498 = vmatmul.mubr.f32.gmra.mxu1 %v936_v38 }
  0xb5   : > { %2500 = vmatprep.mubr.f32.mxu1 %v937_v39 }
  0xb8   : > { %2501 = vmatmul.mubr.f32.gmra.mxu1 %v938_v40  ;;  %2428 = vmatmul.mubr.bf16.gmra.mxu0 %v2620_v0 }
  0xb9   : > { %2503 = vmatprep.mubr.f32.mxu1 %v939_v41  ;;  %2431 = vmatprep.mubr.bf16.mxu0 %v2621_v1 }
  0xbc   : > { %2504 = vmatmul.mubr.f32.gmra.mxu1 %v940_v42 }
  0xbd   : > { %2506 = vmatprep.mubr.f32.mxu1 %v941_v43 }
  0xc0   : > { %2507 = vmatmul.mubr.f32.gmra.mxu1 %v942_v44  ;;  %2432 = vmatmul.mubr.bf16.gmra.mxu0 %v2622_v2 }
  0xc1   : > { %2509 = vmatprep.mubr.f32.mxu1 %v943_v45  ;;  %2435 = vmatprep.mubr.bf16.mxu0 %v2623_v3 }
  0xc4   : > { %2510 = vmatmul.mubr.f32.gmra.mxu1 %v944_v46 }
  0xc5   : > { %2512 = vmatprep.mubr.f32.mxu1 %v945_v47 }
  0xc8   : > { %2513 = vmatmul.mubr.f32.gmra.mxu1 %v946_v48  ;;  %2436 = vmatmul.mubr.bf16.gmra.mxu0 %v2624_v4 }
  0xc9   : > { %2515 = vmatprep.mubr.f32.mxu1 %v947_v49  ;;  %2439 = vmatprep.mubr.bf16.mxu0 %v2625_v5 }
  0xcc   : > { %2516 = vmatmul.mubr.f32.gmra.mxu1 %v948_v50 }
  0xcd   : > { %2518 = vmatprep.mubr.f32.mxu1 %v949_v51 }
  0xd0   : > { %2519 = vmatmul.mubr.f32.gmra.mxu1 %v950_v52  ;;  %2440 = vmatmul.mubr.bf16.gmra.mxu0 %v2626_v6 }
  0xd1   : > { %2521 = vmatprep.mubr.f32.mxu1 %v951_v53  ;;  %2443 = vmatprep.mubr.bf16.mxu0 %v2627_v7 }
  0xd4   : > { %2522 = vmatmul.mubr.f32.gmra.mxu1 %v952_v54 }
  0xd5   : > { %2524 = vmatprep.mubr.f32.mxu1 %v953_v55 }
  0xd8   : > { %2525 = vmatmul.mubr.f32.gmra.mxu1 %v954_v56  ;;  %2444 = vmatmul.mubr.bf16.gmra.mxu0 %v2628_v8 }
 0x15c   : > { %v2481_v10 = vpop.f32.mrf.mxu1 }
 0x15d   : > { %v1050_v11 = vadd.f32 %v2481_v10, %v3319_v9 }
 0x15e   : > { %v1044_v12 = vpop.f32.mrf.mxu1 }
 0x15f   : > { %v1204_v14 = vmax.f32 %v1050_v11, 0.0  ;;  %v1045_v15 = vadd.f32 %v3319_v9, %v1044_v12 }
 0x160   : > { %v2484_v16 = vpop.f32.mrf.mxu1 }
 0x161   : > { %v1203_v17 = vmax.f32 %v1045_v15, 0.0  ;;  %v1060_v18 = vadd.f32 %v2484_v16, %v3319_v9  ;;  %v1243_v19 = vmul.f32 %v3325_v13, %v1204_v14 }
 0x162   : > { %v1054_v20 = vpop.f32.mrf.mxu1 }
 0x163   : > { %v1206_v21 = vmax.f32 %v1060_v18, 0.0  ;;  %v1055_v22 = vadd.f32 %v3319_v9, %v1054_v20  ;;  %1276 = vadd.xlane.f32.xlu0 %v1243_v19  ;;  %v1242_v27 = vmul.f32 %v3325_v13, %v1203_v17 }
 0x164   : > { %v2487_v23 = vpop.f32.mrf.mxu1 }
 0x165   : > { %v1205_v24 = vmax.f32 %v1055_v22, 0.0  ;;  %v1070_v25 = vadd.f32 %v2487_v23, %v3319_v9  ;;  %v1245_v26 = vmul.f32 %v3325_v13, %v1206_v21 }
 0x166   : > { %v1064_v28 = vpop.f32.mrf.mxu1 }
 0x167   : > { %v1065_v29 = vadd.f32 %v3319_v9, %v1064_v28  ;;  %1280 = vadd.xlane.f32.xlu1 %v1245_v26  ;;  %1274 = vadd.xlane.f32.xlu0 %v1242_v27  ;;  %v1208_v31 = vmax.f32 %v1070_v25, 0.0  ;;  %v1244_v34 = vmul.f32 %v3325_v13, %v1205_v24 }
 0x168   : > { %v2490_v30 = vpop.f32.mrf.mxu1 }
 0x169   : > { %v1207_v32 = vmax.f32 %v1065_v29, 0.0  ;;  %v1080_v33 = vadd.f32 %v2490_v30, %v3319_v9  ;;  %v1247_v42 = vmul.f32 %v3325_v13, %v1208_v31 }
 0x16a   : > { %v1074_v35 = vpop.f32.mrf.mxu1 }
 0x16b   : > { %v1075_v36 = vadd.f32 %v3319_v9, %v1074_v35  ;;  %1278 = vadd.xlane.f32.xlu1 %v1244_v34  ;;  %v1246_v37 = vmul.f32 %v3325_v13, %v1207_v32  ;;  %v1210_v39 = vmax.f32 %v1080_v33, 0.0 }
 0x16c   : > { %v2493_v38 = vpop.f32.mrf.mxu1 }
 0x16d   : > { %v1209_v40 = vmax.f32 %v1075_v36, 0.0  ;;  %v1090_v41 = vadd.f32 %v2493_v38, %v3319_v9  ;;  %1282 = vadd.xlane.f32.xlu0 %v1246_v37  ;;  %v1249_v50 = vmul.f32 %v3325_v13, %v1210_v39 }
 0x16e   : > { %v1084_v43 = vpop.f32.mrf.mxu1 }
 0x16f   : > { %v1085_v44 = vadd.f32 %v3319_v9, %v1084_v43  ;;  %1284 = vadd.xlane.f32.xlu1 %v1247_v42  ;;  %v1248_v45 = vmul.f32 %v3325_v13, %v1209_v40  ;;  %v1212_v47 = vmax.f32 %v1090_v41, 0.0 }
 0x170   : > { %v2496_v46 = vpop.f32.mrf.mxu1 }
 0x171   : > { %v1211_v48 = vmax.f32 %v1085_v44, 0.0  ;;  %v1100_v49 = vadd.f32 %v2496_v46, %v3319_v9  ;;  %1286 = vadd.xlane.f32.xlu0 %v1248_v45  ;;  %v1251_v58 = vmul.f32 %v3325_v13, %v1212_v47 }
 0x172   : > { %v1094_v51 = vpop.f32.mrf.mxu1 }
 0x173   : > { %v1095_v52 = vadd.f32 %v3319_v9, %v1094_v51  ;;  %1288 = vadd.xlane.f32.xlu1 %v1249_v50  ;;  %v1250_v53 = vmul.f32 %v3325_v13, %v1211_v48  ;;  %v1214_v55 = vmax.f32 %v1100_v49, 0.0 }
 0x174   : > { %v2499_v54 = vpop.f32.mrf.mxu1 }
 0x175   : > { %v1213_v56 = vmax.f32 %v1095_v52, 0.0  ;;  %v1110_v57 = vadd.f32 %v2499_v54, %v3319_v9  ;;  %1290 = vadd.xlane.f32.xlu0 %v1250_v53  ;;  %v1253_v2 = vmul.f32 %v3325_v13, %v1214_v55 }
 0x176   : > { %v1104_v59 = vpop.f32.mrf.mxu1 }
 0x177   : > { %v1105_v60 = vadd.f32 %v3319_v9, %v1104_v59  ;;  %1292 = vadd.xlane.f32.xlu1 %v1251_v58  ;;  %v1252_v61 = vmul.f32 %v3325_v13, %v1213_v56  ;;  %v1216_v63 = vmax.f32 %v1110_v57, 0.0 }
 0x178   : > { %v2502_v62 = vpop.f32.mrf.mxu1 }
 0x179   : > { %v1215_v0 = vmax.f32 %v1105_v60, 0.0  ;;  %v1120_v1 = vadd.f32 %v2502_v62, %v3319_v9  ;;  %1294 = vadd.xlane.f32.xlu0 %v1252_v61  ;;  %v1255_v11 = vmul.f32 %v3325_v13, %v1216_v63 }
 0x17a   : > { %v1114_v3 = vpop.f32.mrf.mxu1 }
 0x17b   : > { %v1115_v4 = vadd.f32 %v3319_v9, %v1114_v3  ;;  %1296 = vadd.xlane.f32.xlu1 %v1253_v2  ;;  %v1254_v5 = vmul.f32 %v3325_v13, %v1215_v0  ;;  %v1218_v7 = vmax.f32 %v1120_v1, 0.0 }
 0x17c   : > { %v2505_v6 = vpop.f32.mrf.mxu1 }
 0x17d   : > { %v1217_v8 = vmax.f32 %v1115_v4, 0.0  ;;  %v1130_v10 = vadd.f32 %v2505_v6, %v3319_v9  ;;  %1298 = vadd.xlane.f32.xlu0 %v1254_v5  ;;  %v1257_v20 = vmul.f32 %v3325_v13, %v1218_v7 }
 0x17e   : > { %v1124_v12 = vpop.f32.mrf.mxu1 }
 0x17f   : > { %v1125_v14 = vadd.f32 %v3319_v9, %v1124_v12  ;;  %1300 = vadd.xlane.f32.xlu1 %v1255_v11  ;;  %v1256_v15 = vmul.f32 %v3325_v13, %v1217_v8  ;;  %v1220_v17 = vmax.f32 %v1130_v10, 0.0 }
 0x180   : > { %v2508_v16 = vpop.f32.mrf.mxu1 }
 0x181   : > { %v1219_v18 = vmax.f32 %v1125_v14, 0.0  ;;  %v1140_v19 = vadd.f32 %v2508_v16, %v3319_v9  ;;  %1302 = vadd.xlane.f32.xlu0 %v1256_v15  ;;  %v1259_v28 = vmul.f32 %v3325_v13, %v1220_v17  ;;  %v2417_v15 = vpop.f32.mrf.mxu0 }
 0x182   : > { %v1134_v21 = vpop.f32.mrf.mxu1 }
 0x183   : > { %v1135_v22 = vadd.f32 %v3319_v9, %v1134_v21  ;;  %1304 = vadd.xlane.f32.xlu1 %v1257_v20  ;;  %v1258_v23 = vmul.f32 %v3325_v13, %v1219_v18  ;;  %v1222_v25 = vmax.f32 %v1140_v19, 0.0  ;;  %v636_v16 = vpop.f32.mrf.mxu0 }
 0x184   : > { %v2511_v24 = vpop.f32.mrf.mxu1 }
 0x185   : > { %v1221_v26 = vmax.f32 %v1135_v22, 0.0  ;;  %v1150_v27 = vadd.f32 %v2511_v24, %v3319_v9  ;;  %1306 = vadd.xlane.f32.xlu0 %v1258_v23  ;;  %v1261_v36 = vmul.f32 %v3325_v13, %v1222_v25  ;;  %v2418_v17 = vpop.f32.mrf.mxu0 }
 0x186   : > { %v1144_v29 = vpop.f32.mrf.mxu1  ;;  %v2240_v18 = vpack.c.bf16 %v2418_v17, %v2417_v15 }
 0x187   : > { %v1145_v30 = vadd.f32 %v3319_v9, %v1144_v29  ;;  %1308 = vadd.xlane.f32.xlu1 %v1259_v28  ;;  %v1260_v31 = vmul.f32 %v3325_v13, %v1221_v26  ;;  %v1224_v33 = vmax.f32 %v1150_v27, 0.0 }
 0x188   : > { %v2514_v32 = vpop.f32.mrf.mxu1  ;;  %2312 = vst [vmem:[%s3392_s21 + $0x8] sm:$0xff] %v2240_v18  }
 0x189   : > { %v1223_v34 = vmax.f32 %v1145_v30, 0.0  ;;  %v1160_v35 = vadd.f32 %v2514_v32, %v3319_v9  ;;  %1310 = vadd.xlane.f32.xlu0 %v1260_v31  ;;  %v1263_v44 = vmul.f32 %v3325_v13, %v1224_v33 }
 0x18a   : > { %v1154_v37 = vpop.f32.mrf.mxu1 }
 0x18b   : > { %v1155_v38 = vadd.f32 %v3319_v9, %v1154_v37  ;;  %1312 = vadd.xlane.f32.xlu1 %v1261_v36  ;;  %v1262_v39 = vmul.f32 %v3325_v13, %v1223_v34  ;;  %v1226_v41 = vmax.f32 %v1160_v35, 0.0 }
 0x18c   : > { %v2517_v40 = vpop.f32.mrf.mxu1 }
 0x18d   : > { %v1225_v42 = vmax.f32 %v1155_v38, 0.0  ;;  %v1170_v43 = vadd.f32 %v2517_v40, %v3319_v9  ;;  %1314 = vadd.xlane.f32.xlu0 %v1262_v39  ;;  %v1265_v52 = vmul.f32 %v3325_v13, %v1226_v41 }
 0x18e   : > { %v1164_v45 = vpop.f32.mrf.mxu1 }
 0x18f   : > { %v1165_v46 = vadd.f32 %v3319_v9, %v1164_v45  ;;  %1316 = vadd.xlane.f32.xlu1 %v1263_v44  ;;  %v1264_v47 = vmul.f32 %v3325_v13, %v1225_v42  ;;  %v1228_v49 = vmax.f32 %v1170_v43, 0.0 }
 0x190   : > { %v2520_v48 = vpop.f32.mrf.mxu1 }
 0x191   : > { %v1227_v50 = vmax.f32 %v1165_v46, 0.0  ;;  %v1180_v51 = vadd.f32 %v2520_v48, %v3319_v9  ;;  %1318 = vadd.xlane.f32.xlu0 %v1264_v47  ;;  %v1267_v60 = vmul.f32 %v3325_v13, %v1228_v49 }
 0x192   : > { %v1174_v53 = vpop.f32.mrf.mxu1 }
 0x193   : > { %v1175_v54 = vadd.f32 %v3319_v9, %v1174_v53  ;;  %1320 = vadd.xlane.f32.xlu1 %v1265_v52  ;;  %v1266_v55 = vmul.f32 %v3325_v13, %v1227_v50  ;;  %v1230_v57 = vmax.f32 %v1180_v51, 0.0 }
 0x194   : > { %v2523_v56 = vpop.f32.mrf.mxu1 }
 0x195   : > { %v1229_v58 = vmax.f32 %v1175_v54, 0.0  ;;  %v1190_v59 = vadd.f32 %v2523_v56, %v3319_v9  ;;  %1322 = vadd.xlane.f32.xlu0 %v1266_v55  ;;  %v1269_v4 = vmul.f32 %v3325_v13, %v1230_v57 }
 0x196   : > { %v1184_v61 = vpop.f32.mrf.mxu1 }
 0x197   : > { %v1185_v62 = vadd.f32 %v3319_v9, %v1184_v61  ;;  %1324 = vadd.xlane.f32.xlu1 %v1267_v60  ;;  %v1268_v63 = vmul.f32 %v3325_v13, %v1229_v58  ;;  %v1232_v1 = vmax.f32 %v1190_v59, 0.0 }
 0x198   : > { %v2526_v0 = vpop.f32.mrf.mxu1 }
 0x199   : > { %v1231_v2 = vmax.f32 %v1185_v62, 0.0  ;;  %v1200_v3 = vadd.f32 %v2526_v0, %v3319_v9  ;;  %1326 = vadd.xlane.f32.xlu0 %v1268_v63  ;;  %v1271_v11 = vmul.f32 %v3325_v13, %v1232_v1 }
 0x19a   : > { %v1194_v5 = vpop.f32.mrf.mxu1 }
 0x19b   : > { %v1234_v6 = vmax.f32 %v1200_v3, 0.0  ;;  %v1195_v7 = vadd.f32 %v3319_v9, %v1194_v5  ;;  %1328 = vadd.xlane.f32.xlu1 %v1269_v4  ;;  %v1270_v8 = vmul.f32 %v3325_v13, %v1231_v2  ;;  %v639_v9 = vpop.f32.mrf.mxu0 }
 0x19c   : > { %v2235_v19 = vpack.c.bf16 %v639_v9, %v636_v16 }
 0x19d   : > { %v1233_v10 = vmax.f32 %v1195_v7, 0.0  ;;  %1330 = vadd.xlane.f32.xlu0 %v1270_v8  ;;  %v1273_v12 = vmul.f32 %v3325_v13, %v1234_v6  ;;  %v2421_v20 = vpop.f32.mrf.mxu0 }
 0x19e   : > { %2236 = vst [vmem:[%s3392_s21] sm:$0xff] %v2235_v19  }
 0x19f   : > { %1332 = vadd.xlane.f32.xlu1 %v1271_v11  ;;  %v1272_v14 = vmul.f32 %v3325_v13, %v1233_v10  ;;  %v652_v21 = vpop.f32.mrf.mxu0  ;;  %v3396_v13 = vld [vmem:[#allocation2] ss:$0 sm:$0xff] }
 0x1a1   : > { %1334 = vadd.xlane.f32.xlu0 %v1272_v14  ;;  %v2422_v23 = vpop.f32.mrf.mxu0 }
 0x1a2   : > { %v2250_v27 = vpack.c.bf16 %v2422_v23, %v2421_v20 }
 0x1a3   : > { %1336 = vadd.xlane.f32.xlu1 %v1273_v12  ;;  %v655_v25 = vpop.f32.mrf.mxu0 }
 0x1a4   : > { %v2245_v28 = vpack.c.bf16 %v655_v25, %v652_v21  ;;  %2314 = vst [vmem:[%s3392_s21 + $0x18] sm:$0xff] %v2250_v27  }
 0x1a5   : > { %v2425_v34 = vpop.f32.mrf.mxu0 }
 0x1a6   : > { %2313 = vst [vmem:[%s3392_s21 + $0x10] sm:$0xff] %v2245_v28  }
 0x1a7   : > { %v668_v37 = vpop.f32.mrf.mxu0 }
 0x1a9   : > { %v2426_v42 = vpop.f32.mrf.mxu0 }
 0x1aa   : > { %v2260_v51 = vpack.c.bf16 %v2426_v42, %v2425_v34 }
 0x1ab   : > { %v671_v48 = vpop.f32.mrf.mxu0 }
 0x1ac   : > { %v2255_v52 = vpack.c.bf16 %v671_v48, %v668_v37  ;;  %2316 = vst [vmem:[%s3392_s21 + $0x28] sm:$0xff] %v2260_v51  }
 0x1ad   : > { %v2429_v55 = vpop.f32.mrf.mxu0 }
 0x1ae   : > { %2315 = vst [vmem:[%s3392_s21 + $0x20] sm:$0xff] %v2255_v52  }
 0x1af   : > { %v684_v61 = vpop.f32.mrf.mxu0 }
 0x1b1   : > { %v2430_v2 = vpop.f32.mrf.mxu0 }
 0x1b2   : > { %v2270_v8 = vpack.c.bf16 %v2430_v2, %v2429_v55 }
 0x1b3   : > { %v687_v10 = vpop.f32.mrf.mxu0 }
 0x1b4   : > { %v2265_v15 = vpack.c.bf16 %v687_v10, %v684_v61  ;;  %2318 = vst [vmem:[%s3392_s21 + $0x38] sm:$0xff] %v2270_v8  }
 0x1b6   : > { %2317 = vst [vmem:[%s3392_s21 + $0x30] sm:$0xff] %v2265_v15  }
 0x1ec   : > { %v1277_v22 = vpop.xlane.xlu0 %1276 }
 0x1ed   : > { %v3399_v24 = vadd.f32 %v3396_v13, %v1277_v22 }
 0x1ef   : > { %v1410_v26 = vand.u32 2147483647, %v3399_v24  ;;  %v1378_v25 = vmax.f32 %v3399_v24, 0.0 }
 0x1f0   : > { %v1281_v29 = vpop.xlane.xlu1 %1280  ;;  %v1275_v30 = vpop.xlane.xlu0 %1274 }
 0x1f1   : > { %v1442_v31 = vsub.f32 0.0, %v1410_v26  ;;  %v3403_v32 = vadd.f32 %v3396_v13, %v1281_v29  ;;  %v3406_v33 = vadd.f32 %v3396_v13, %v1275_v30 }
 0x1f3   : > { %v1475_v35 = vmul.f32 1.442695, %v1442_v31  ;;  %v1412_v36 = vand.u32 2147483647, %v3403_v32  ;;  %v1409_v38 = vand.u32 2147483647, %v3406_v33 }
 0x1f4   : > { %v1279_v39 = vpop.xlane.xlu1 %1278  ;;  %v1380_v28 = vmax.f32 %v3403_v32, 0.0 }
 0x1f5   : > { %2629 = vpow2.f32 %v1475_v35  ;;  %v1444_v40 = vsub.f32 0.0, %v1412_v36  ;;  %v3413_v41 = vadd.f32 %v3396_v13, %v1279_v39  ;;  %v1441_v43 = vsub.f32 0.0, %v1409_v38 }
 0x1f6   : > { %v1283_v44 = vpop.xlane.xlu0 %1282  ;;  %v1377_v36 = vmax.f32 %v3406_v33, 0.0 }
 0x1f7   : > { %v1479_v45 = vmul.f32 1.442695, %v1444_v40  ;;  %v1411_v46 = vand.u32 2147483647, %v3413_v41  ;;  %v3417_v47 = vadd.f32 %v3396_v13, %v1283_v44  ;;  %v1473_v49 = vmul.f32 1.442695, %v1441_v43 }
 0x1f8   : > { %v1285_v50 = vpop.xlane.xlu1 %1284  ;;  %v1379_v37 = vmax.f32 %v3413_v41, 0.0 }
 0x1f9   : > { %2631 = vpow2.f32 %v1479_v45  ;;  %v1443_v53 = vsub.f32 0.0, %v1411_v46  ;;  %v1413_v54 = vand.u32 2147483647, %v3417_v47  ;;  %v3421_v56 = vadd.f32 %v3396_v13, %v1285_v50 }
 0x1fa   : > { %2633 = vpow2.f32 %v1473_v49  ;;  %v1287_v57 = vpop.xlane.xlu0 %1286  ;;  %v1381_v39 = vmax.f32 %v3417_v47, 0.0 }
 0x1fb   : > { %v1477_v58 = vmul.f32 1.442695, %v1443_v53  ;;  %v1445_v59 = vsub.f32 0.0, %v1413_v54  ;;  %v3426_v60 = vadd.f32 %v3396_v13, %v1287_v57  ;;  %v1414_v62 = vand.u32 2147483647, %v3421_v56 }
 0x1fc   : > { %v1289_v63 = vpop.xlane.xlu1 %1288  ;;  %v1382_v46 = vmax.f32 %v3421_v56, 0.0 }
 0x1fd   : > { %2635 = vpow2.f32 %v1477_v58  ;;  %v1481_v0 = vmul.f32 1.442695, %v1445_v59  ;;  %v1415_v1 = vand.u32 2147483647, %v3426_v60  ;;  %v1446_v3 = vsub.f32 0.0, %v1414_v62 }
 0x1fe   : > { %v3431_v4 = vadd.f32 %v3396_v13, %v1289_v63  ;;  %v1291_v5 = vpop.xlane.xlu0 %1290  ;;  %v1383_v48 = vmax.f32 %v3426_v60, 0.0 }
 0x1ff   : > { %2637 = vpow2.f32 %v1481_v0  ;;  %v1447_v6 = vsub.f32 0.0, %v1415_v1  ;;  %v3434_v7 = vadd.f32 %v3396_v13, %v1291_v5  ;;  %v1483_v11 = vmul.f32 1.442695, %v1446_v3 }
 0x200   : > { %v1416_v12 = vand.u32 2147483647, %v3431_v4  ;;  %v1293_v14 = vpop.xlane.xlu1 %1292  ;;  %v1384_v49 = vmax.f32 %v3431_v4, 0.0 }
 0x201   : > { %v1485_v16 = vmul.f32 1.442695, %v1447_v6  ;;  %v1417_v17 = vand.u32 2147483647, %v3434_v7  ;;  %v3439_v18 = vadd.f32 %v3396_v13, %v1293_v14  ;;  %2639 = vpow2.f32 %v1483_v11 }
 0x202   : > { %v2630_v9 = vpop.eup %2629  ;;  %v1448_v19 = vsub.f32 0.0, %v1416_v12  ;;  %v1295_v26 = vpop.xlane.xlu0 %1294  ;;  %v1385_v0 = vmax.f32 %v3434_v7, 0.0 }
 0x203   : > { %v1546_v20 = vadd.f32 1.0, %v2630_v9  ;;  %2641 = vpow2.f32 %v1485_v16  ;;  %v1449_v22 = vsub.f32 0.0, %v1417_v17  ;;  %v1418_v23 = vand.u32 2147483647, %v3439_v18 }
 0x204   : > { %v1487_v21 = vmul.f32 1.442695, %v1448_v19  ;;  %v1549_v34 = vmul.f32 -0.5, %v2630_v9  ;;  %v3450_v40 = vadd.f32 %v3396_v13, %v1295_v26  ;;  %v1552_v51 = vand.u32 2147483647, %v2630_v9  ;;  %v1297_v54 = vpop.xlane.xlu1 %1296 }
 0x205   : > { %2643 = vlog2.f32 %v1546_v20  ;;  %v1489_v29 = vmul.f32 1.442695, %v1449_v22  ;;  %v1450_v30 = vsub.f32 0.0, %v1418_v23  ;;  %v1386_v1 = vmax.f32 %v3439_v18, 0.0 }
 0x206   : > { %v2632_v27 = vpop.eup %2631  ;;  %2645 = vpow2.f32 %v1487_v21  ;;  %v1550_v50 = vadd.f32 1.0, %v1549_v34  ;;  %v1419_v59 = vand.u32 2147483647, %v3450_v40  ;;  %v3459_v3 = vadd.f32 %v3396_v13, %v1297_v54  ;;  %v1299_v23 = vpop.xlane.xlu0 %1298 }
 0x207   : > { %v2634_v31 = vpop.eup %2633  ;;  %v1564_v35 = vadd.f32 1.0, %v2632_v27  ;;  %2647 = vpow2.f32 %v1489_v29  ;;  %v1567_v42 = vmul.f32 -0.5, %v2632_v27  ;;  %v1491_v44 = vmul.f32 1.442695, %v1450_v30 }
 0x208   : > { %v1537_v38 = vadd.f32 1.0, %v2634_v31  ;;  %v1540_v43 = vmul.f32 -0.5, %v2634_v31  ;;  %v1570_v57 = vand.u32 2147483647, %v2632_v27  ;;  %v1543_v58 = vand.u32 2147483647, %v2634_v31  ;;  %v1301_v26 = vpop.xlane.xlu1 %1300 }
 0x209   : > { %2649 = vlog2.f32 %v1564_v35  ;;  %v1568_v61 = vadd.f32 1.0, %v1567_v42  ;;  %v1451_v2 = vsub.f32 0.0, %v1419_v59  ;;  %vm3461_vm0 = vcmp.lt.f32.partialorder %v1552_v51, 0.0004427343 }
 0x20a   : > { %v2636_v45 = vpop.eup %2635  ;;  %2651 = vlog2.f32 %v1537_v38  ;;  %v1541_v62 = vadd.f32 1.0, %v1540_v43  ;;  %v1551_v12 = vmul.f32 %v2630_v9, %v1550_v50  ;;  %vm3467_vm1 = vcmp.lt.f32.partialorder %v1570_v57, 0.0004427343 }
 0x20b   : > { %v1555_v52 = vadd.f32 1.0, %v2636_v45  ;;  %v1558_v53 = vmul.f32 -0.5, %v2636_v45  ;;  %2653 = vpow2.f32 %v1491_v44  ;;  %v1561_v15 = vand.u32 2147483647, %v2636_v45 }
 0x20c   : > { %v2638_v55 = vpop.eup %2637  ;;  %v1569_v17 = vmul.f32 %v2632_v27, %v1568_v61  ;;  %v1542_v19 = vmul.f32 %v2634_v31, %v1541_v62  ;;  %vm3471_vm2 = vcmp.lt.f32.partialorder %v1543_v58, 0.0004427343  ;;  %v1493_v9 = vmul.f32 1.442695, %v1451_v2 }
 0x20d   : > { %2655 = vlog2.f32 %v1555_v52  ;;  %v1573_v63 = vadd.f32 1.0, %v2638_v55  ;;  %v1559_v8 = vadd.f32 1.0, %v1558_v53  ;;  %v1576_v10 = vmul.f32 -0.5, %v2638_v55 }
 0x20e   : > { %v2640_v5 = vpop.eup %2639  ;;  %v1579_v30 = vand.u32 2147483647, %v2638_v55  ;;  %v1420_v34 = vand.u32 2147483647, %v3459_v3  ;;  %vm3479_vm3 = vcmp.lt.f32.partialorder %v1561_v15, 0.0004427343  ;;  %v3486_v50 = vadd.f32 %v3396_v13, %v1299_v23 }
 0x20f   : > { %2657 = vlog2.f32 %v1573_v63  ;;  %v1582_v16 = vadd.f32 1.0, %v2640_v5  ;;  %v1585_v21 = vmul.f32 -0.5, %v2640_v5  ;;  %v1560_v27 = vmul.f32 %v2636_v45, %v1559_v8 }
 0x210   : > { %v3465_v11 = vpop.eup %2641  ;;  %v1577_v31 = vadd.f32 1.0, %v1576_v10  ;;  %v3489_v51 = vadd.f32 %v3396_v13, %v1301_v26  ;;  %v1588_v54 = vand.u32 2147483647, %v2640_v5  ;;  %vm3497_vm4 = vcmp.lt.f32.partialorder %v1579_v30, 0.0004427343 }
 0x211   : > { %v1591_v22 = vadd.f32 1.0, %v3465_v11  ;;  %2659 = vlog2.f32 %v1582_v16  ;;  %v1594_v43 = vmul.f32 -0.5, %v3465_v11  ;;  %v1586_v53 = vadd.f32 1.0, %v1585_v21 }
 0x212   : > { %v2644_v29 = vpop.eup %2643  ;;  %v1597_v61 = vand.u32 2147483647, %v3465_v11  ;;  %v1578_v6 = vmul.f32 %v2638_v55, %v1577_v31  ;;  %v1452_v10 = vsub.f32 0.0, %v1420_v34  ;;  %vm3509_vm5 = vcmp.lt.f32.partialorder %v1588_v54, 0.0004427343 }
 0x213   : > { %v3477_v35 = vpop.eup %2645  ;;  %v1548_v38 = vmul.f32 0.6931472, %v2644_v29  ;;  %2661 = vlog2.f32 %v1591_v22  ;;  %v1587_v21 = vmul.f32 %v2640_v5, %v1586_v53  ;;  %v1421_v53 = vand.u32 2147483647, %v3486_v50 }
 0x214   : > { %v1600_v44 = vadd.f32 1.0, %v3477_v35  ;;  %v3491_v52 = vpop.eup %2647  ;;  %2663 = vpow2.f32 %v1493_v9  ;;  %v1603_v8 = vmul.f32 -0.5, %v3477_v35  ;;  %v1606_v23 = vand.u32 2147483647, %v3477_v35 }
 0x215   : > { %v1554_v45 = vsel %vm3461_vm0, %v1551_v12, %v1548_v38  ;;  %v1609_v62 = vadd.f32 1.0, %v3491_v52  ;;  %v1495_v55 = vmul.f32 1.442695, %v1452_v10  ;;  %vm3527_vm6 = vcmp.lt.f32.partialorder %v1597_v61, 0.0004427343 }
 0x216   : > { %v2650_v57 = vpop.eup %2649  ;;  %v1826_v58 = vadd.f32 %v1554_v45, %v1378_v25  ;;  %2665 = vlog2.f32 %v1600_v44  ;;  %v1595_v25 = vadd.f32 1.0, %v1594_v43  ;;  %v1604_v34 = vadd.f32 1.0, %v1603_v8  ;;  %v1305_v8 = vpop.xlane.xlu1 %1304 }
 0x217   : > { %v2652_v63 = vpop.eup %2651  ;;  %v1566_v2 = vmul.f32 0.6931472, %v2650_v57  ;;  %2667 = vlog2.f32 %v1609_v62  ;;  %vm3543_vm8 = vcmp.lt.f32.partialorder %v1606_v23, 0.0004427343 }
 0x218   : > { %v1858_v12 = vadd.f32 1e-06, %v1826_v58  ;;  %v1539_v24 = vmul.f32 0.6931472, %v2652_v63  ;;  %v3505_v15 = vpop.eup %2653  ;;  %v1596_v32 = vmul.f32 %v3465_v11, %v1595_v25  ;;  %v1605_v42 = vmul.f32 %v3477_v35, %v1604_v34 }
 0x219   : > { %v1572_v16 = vsel %vm3467_vm1, %v1569_v17, %v1566_v2  ;;  %v1618_v14 = vadd.f32 1.0, %v3505_v15  ;;  %v1621_v44 = vmul.f32 -0.5, %v3505_v15  ;;  %v1615_v58 = vand.u32 2147483647, %v3491_v52 }
 0x21a   : > { %v2656_v26 = vpop.eup %2655  ;;  %2669 = vrcp.f32 %v1858_v12  ;;  %v1828_v29 = vadd.f32 %v1572_v16, %v1380_v28  ;;  %v1545_v5 = vsel %vm3471_vm2, %v1542_v19, %v1539_v24  ;;  %v1612_v28 = vmul.f32 -0.5, %v3491_v52  ;;  %v1309_v9 = vpop.xlane.xlu1 %1308 }
 0x21b   : > { %v1825_v17 = vadd.f32 %v1545_v5, %v1377_v36  ;;  %v1557_v30 = vmul.f32 0.6931472, %v2656_v26  ;;  %2671 = vlog2.f32 %v1618_v14  ;;  %v1303_v36 = vpop.xlane.xlu0 %1302  ;;  %v1624_v63 = vand.u32 2147483647, %v3505_v15 }
 0x21c   : > { %v2658_v38 = vpop.eup %2657  ;;  %v1860_v31 = vadd.f32 1e-06, %v1828_v29  ;;  %2673 = vpow2.f32 %v1495_v55  ;;  %v1613_v62 = vadd.f32 1.0, %v1612_v28  ;;  %v1453_v2 = vsub.f32 0.0, %v1421_v53 }
 0x21d   : > { %v1857_v19 = vadd.f32 1e-06, %v1825_v17  ;;  %v1563_v33 = vsel %vm3479_vm3, %v1560_v27, %v1557_v30  ;;  %v1575_v20 = vmul.f32 0.6931472, %v2658_v38  ;;  %v1622_v10 = vadd.f32 1.0, %v1621_v44 }
 0x21e   : > { %2675 = vrcp.f32 %v1860_v31  ;;  %v1827_v43 = vadd.f32 %v1563_v33, %v1379_v37  ;;  %v2660_v45 = vpop.eup %2659  ;;  %v1422_v25 = vand.u32 2147483647, %v3489_v51  ;;  %v1497_v26 = vmul.f32 1.442695, %v1453_v2  ;;  %v1313_v53 = vpop.xlane.xlu1 %1312 }
 0x21f   : > { %2677 = vrcp.f32 %v1857_v19  ;;  %v1581_v27 = vsel %vm3497_vm4, %v1578_v6, %v1575_v20  ;;  %v1584_v37 = vmul.f32 0.6931472, %v2660_v45  ;;  %v1307_v16 = vpop.xlane.xlu0 %1306  ;;  %vm1616_vm9 = vcmp.lt.f32.partialorder %v1615_v58, 0.0004427343 }
 0x220   : > { %v2662_v54 = vpop.eup %2661  ;;  %v1859_v57 = vadd.f32 1e-06, %v1827_v43  ;;  %v1829_v41 = vadd.f32 %v1581_v27, %v1381_v39  ;;  %vm3582_vm10 = vcmp.lt.f32.partialorder %v1624_v63, 0.0004427343  ;;  %v1454_v30 = vsub.f32 0.0, %v1422_v25 }
 0x221   : > { %v1593_v61 = vmul.f32 0.6931472, %v2662_v54  ;;  %v3556_v59 = vpop.eup %2663  ;;  %v1590_v6 = vsel %vm3509_vm5, %v1587_v21, %v1584_v37  ;;  %v3570_v21 = vadd.f32 %v3396_v13, %v1303_v36  ;;  %v1623_v34 = vmul.f32 %v3505_v15, %v1622_v10 }
 0x222   : > { %2679 = vrcp.f32 %v1859_v57  ;;  %v1861_v35 = vadd.f32 1e-06, %v1829_v41  ;;  %v1830_v39 = vadd.f32 %v1590_v6, %v1382_v46  ;;  %v1627_v24 = vadd.f32 1.0, %v3556_v59 }
 0x223   : > { %v2666_v47 = vpop.eup %2665  ;;  %v1599_v12 = vsel %vm3527_vm6, %v1596_v32, %v1593_v61  ;;  %v1614_v46 = vmul.f32 %v3491_v52, %v1613_v62  ;;  %v1423_v38 = vand.u32 2147483647, %v3570_v21  ;;  %v1311_v28 = vpop.xlane.xlu0 %1310  ;;  %v1630_v20 = vmul.f32 -0.5, %v3556_v59 }
 0x224   : > { %2681 = vrcp.f32 %v1861_v35  ;;  %v1831_v23 = vadd.f32 %v1599_v12, %v1383_v48  ;;  %v1602_v55 = vmul.f32 0.6931472, %v2666_v47  ;;  %v2668_v22 = vpop.eup %2667  ;;  %v1862_v56 = vadd.f32 1e-06, %v1830_v39 }
 0x225   : > { %2683 = vlog2.f32 %v1627_v24  ;;  %v1611_v48 = vmul.f32 0.6931472, %v2668_v22  ;;  %v1455_v36 = vsub.f32 0.0, %v1423_v38  ;;  %v3596_v15 = vadd.f32 %v3396_v13, %v1305_v8  ;;  %v3638_v22 = vpop.f32.mrf.mxu0 }
 0x226   : > { %v1863_v29 = vadd.f32 1e-06, %v1831_v23  ;;  %v1608_v60 = vsel %vm3543_vm8, %v1605_v42, %v1602_v55  ;;  %2685 = vrcp.f32 %v1862_v56  ;;  %v1633_v54 = vand.u32 2147483647, %v3556_v59 }
 0x227   : > { %v2670_v5 = vpop.eup %2669  ;;  %v1832_v14 = vadd.f32 %v1608_v60, %v1384_v49  ;;  %v1617_v52 = vsel %vm1616_vm9, %v1614_v46, %v1611_v48  ;;  %v1499_v49 = vmul.f32 1.442695, %v1454_v30  ;;  %v1501_v27 = vmul.f32 1.442695, %v1455_v36  ;;  %v1315_v62 = vpop.xlane.xlu0 %1314 }
 0x228   : > { %1923 = vst.msk [vmem:[%s3575_s11 + $0x8] sm:$0xff] %vm1921_vm7, %v2670_v5  ;;  %2687 = vrcp.f32 %v1863_v29  ;;  %v2672_v31 = vpop.eup %2671  ;;  %v1833_v4 = vadd.f32 %v1617_v52, %v1385_v0  ;;  %v3600_v0 = vadd.f32 %v3396_v13, %v1307_v16  ;;  %v1424_v57 = vand.u32 2147483647, %v3596_v15  ;;  %v1317_v60 = vpop.xlane.xlu1 %1316 }
 0x229   : > { %v1864_v32 = vadd.f32 1e-06, %v1832_v14  ;;  %2689 = vpow2.f32 %v1497_v26  ;;  %v3592_v19 = vpop.eup %2673  ;;  %v1620_v33 = vmul.f32 0.6931472, %v2672_v31  ;;  %v1631_v58 = vadd.f32 1.0, %v1630_v20 }
 0x22a   : > { %v1865_v11 = vadd.f32 1e-06, %v1833_v4  ;;  %v1636_v7 = vadd.f32 1.0, %v3592_v19  ;;  %v1425_v61 = vand.u32 2147483647, %v3600_v0  ;;  %v1456_v63 = vsub.f32 0.0, %v1424_v57 }
 0x22b   : > { %v2676_v43 = vpop.eup %2675  ;;  %2691 = vrcp.f32 %v1864_v32  ;;  %v1626_v45 = vsel %vm3582_vm10, %v1623_v34, %v1620_v33  ;;  %v3616_v18 = vadd.f32 %v3396_v13, %v1309_v9  ;;  %v3622_v2 = vadd.f32 %v3396_v13, %v1313_v53 }
 0x22c   : > { %v2678_v44 = vpop.eup %2677  ;;  %1925 = vst.msk [vmem:[%s3575_s11 + $0x18] sm:$0xff] %vm1921_vm7, %v2676_v43  ;;  %2693 = vpow2.f32 %v1499_v49  ;;  %v1834_v42 = vadd.f32 %v1626_v45, %v1386_v1  ;;  %v3619_v1 = vadd.f32 %v3396_v13, %v1311_v28  ;;  %v1387_v35 = vmax.f32 %v3450_v40, 0.0  ;;  %v3657_v49 = vpop.f32.mrf.mxu0 }
 0x22d   : > { %1922 = vst.msk [vmem:[%s3575_s11] sm:$0xff] %vm1921_vm7, %v2678_v44  ;;  %2695 = vrcp.f32 %v1865_v11  ;;  %v1388_v6 = vmax.f32 %v3459_v3, 0.0  ;;  %v1457_v10 = vsub.f32 0.0, %v1425_v61  ;;  %vm3628_vm11 = vcmp.lt.f32.partialorder %v1633_v54, 0.0004427343  ;;  %v1319_v45 = vpop.xlane.xlu0 %1318 }
 0x22e   : > { %2697 = vlog2.f32 %v1636_v7  ;;  %v1866_v37 = vadd.f32 1e-06, %v1834_v42  ;;  %v1503_v12 = vmul.f32 1.442695, %v1456_v63  ;;  %v1426_v24 = vand.u32 2147483647, %v3616_v18  ;;  %v3675_v61 = vpop.f32.mrf.mxu0 }
 0x22f   : > { %v2680_v41 = vpop.eup %2679  ;;  %2699 = vpow2.f32 %v1501_v27  ;;  %v3634_v25 = vadd.f32 %v3396_v13, %v1315_v62  ;;  %v1632_v40 = vmul.f32 %v3556_v59, %v1631_v58  ;;  %v1505_v23 = vmul.f32 1.442695, %v1457_v10 }
 0x230   : > { %1924 = vst.msk [vmem:[%s3575_s11 + $0x10] sm:$0xff] %vm1921_vm7, %v2680_v41  ;;  %2701 = vrcp.f32 %v1866_v37  ;;  %v1427_v55 = vand.u32 2147483647, %v3619_v1  ;;  %v1639_v46 = vmul.f32 -0.5, %v3592_v19  ;;  %v1458_v26 = vsub.f32 0.0, %v1426_v24 }
 0x231   : > { %v2682_v8 = vpop.eup %2681  ;;  %2703 = vpow2.f32 %v1503_v12  ;;  %v1428_v29 = vand.u32 2147483647, %v3622_v2  ;;  %v1642_v5 = vand.u32 2147483647, %v3592_v19  ;;  %v1429_v34 = vand.u32 2147483647, %v3634_v25 }
 0x232   : > { %v2684_v47 = vpop.eup %2683  ;;  %1926 = vst.msk [vmem:[%s3575_s11 + $0x20] sm:$0xff] %vm1921_vm7, %v2682_v8  ;;  %2705 = vpow2.f32 %v1505_v23  ;;  %v1459_v14 = vsub.f32 0.0, %v1427_v55  ;;  %v1507_v9 = vmul.f32 1.442695, %v1458_v26  ;;  %v1389_v38 = vmax.f32 %v3486_v50, 0.0 }
 0x233   : > { %v1629_v16 = vmul.f32 0.6931472, %v2684_v47  ;;  %v2686_v56 = vpop.eup %2685  ;;  %v1460_v52 = vsub.f32 0.0, %v1428_v29  ;;  %v3655_v4 = vadd.f32 %v3396_v13, %v1317_v60  ;;  %v1640_v20 = vadd.f32 1.0, %v1639_v46 }
 0x234   : > { %1927 = vst.msk [vmem:[%s3575_s11 + $0x28] sm:$0xff] %vm1921_vm7, %v2686_v56  ;;  %v1509_v32 = vmul.f32 1.442695, %v1459_v14  ;;  %2707 = vpow2.f32 %v1507_v9  ;;  %v1461_v36 = vsub.f32 0.0, %v1429_v34  ;;  %v1390_v11 = vmax.f32 %v3489_v51, 0.0  ;;  %v3695_v56 = vpop.f32.mrf.mxu0 }
 0x235   : > { %v2688_v48 = vpop.eup %2687  ;;  %v1635_v59 = vsel %vm3628_vm11, %v1632_v40, %v1629_v16  ;;  %v1391_v7 = vmax.f32 %v3570_v21, 0.0  ;;  %v1511_v44 = vmul.f32 1.442695, %v1460_v52  ;;  %vm3665_vm12 = vcmp.lt.f32.partialorder %v1642_v5, 0.0004427343 }
 0x236   : > { %v3647_v17 = vpop.eup %2689  ;;  %1928 = vst.msk [vmem:[%s3575_s11 + $0x30] sm:$0xff] %vm1921_vm7, %v2688_v48  ;;  %v1835_v30 = vadd.f32 %v1635_v59, %v1387_v35  ;;  %v1392_v54 = vmax.f32 %v3596_v15, 0.0  ;;  %v1393_v41 = vmax.f32 %v3600_v0, 0.0  ;;  %v1513_v37 = vmul.f32 1.442695, %v1461_v36  ;;  %v1321_v48 = vpop.xlane.xlu1 %1320 }
 0x237   : > { %v1645_v31 = vadd.f32 1.0, %v3647_v17  ;;  %v1430_v58 = vand.u32 2147483647, %v3655_v4  ;;  %v1641_v8 = vmul.f32 %v3592_v19, %v1640_v20  ;;  %v3681_v35 = vadd.f32 %v3396_v13, %v1319_v45 }
 0x238   : > { %v2692_v28 = vpop.eup %2691  ;;  %v1867_v33 = vadd.f32 1e-06, %v1835_v30  ;;  %v1648_v10 = vmul.f32 -0.5, %v3647_v17  ;;  %v1394_v16 = vmax.f32 %v3616_v18, 0.0  ;;  %v1651_v23 = vand.u32 2147483647, %v3647_v17 }
 0x239   : > { %v3659_v43 = vpop.eup %2693  ;;  %1929 = vst.msk [vmem:[%s3575_s11 + $0x38] sm:$0xff] %vm1921_vm7, %v2692_v28  ;;  %2709 = vlog2.f32 %v1645_v31  ;;  %v1462_v40 = vsub.f32 0.0, %v1430_v58  ;;  %v1395_v55 = vmax.f32 %v3619_v1, 0.0  ;;  %v1396_v26 = vmax.f32 %v3622_v2, 0.0 }
 0x23a   : > { %v2696_v27 = vpop.eup %2695  ;;  %2711 = vrcp.f32 %v1867_v33  ;;  %v1654_v53 = vadd.f32 1.0, %v3659_v43  ;;  %v1657_v47 = vmul.f32 -0.5, %v3659_v43  ;;  %v1431_v60 = vand.u32 2147483647, %v3681_v35  ;;  %v3710_v33 = vpop.f32.mrf.mxu0 }
 0x23b   : > { %v2698_v57 = vpop.eup %2697  ;;  %1930 = vst.msk [vmem:[%s3575_s11 + $0x40] sm:$0xff] %vm1921_vm7, %v2696_v27  ;;  %2713 = vpow2.f32 %v1509_v32  ;;  %v1515_v29 = vmul.f32 1.442695, %v1462_v40  ;;  %v1649_v14 = vadd.f32 1.0, %v1648_v10  ;;  %v1397_v34 = vmax.f32 %v3634_v25, 0.0 }
 0x23c   : > { %v3677_v62 = vpop.eup %2699  ;;  %v1638_v63 = vmul.f32 0.6931472, %v2698_v57  ;;  %2715 = vlog2.f32 %v1654_v53  ;;  %v1658_v3 = vadd.f32 1.0, %v1657_v47  ;;  %vm3705_vm13 = vcmp.lt.f32.partialorder %v1651_v23, 0.0004427343  ;;  %v1323_v57 = vpop.xlane.xlu0 %1322 }
 0x23d   : > { %v1663_v39 = vadd.f32 1.0, %v3677_v62  ;;  %2717 = vpow2.f32 %v1511_v44  ;;  %v2702_v12 = vpop.eup %2701  ;;  %v1666_v46 = vmul.f32 -0.5, %v3677_v62  ;;  %v1669_v9 = vand.u32 2147483647, %v3677_v62  ;;  %v3730_v40 = vpop.f32.mrf.mxu0 }
 0x23e   : > { %v1644_v24 = vsel %vm3665_vm12, %v1641_v8, %v1638_v63  ;;  %2719 = vpow2.f32 %v1513_v37  ;;  %1931 = vst.msk [vmem:[%s3575_s11 + $0x48] sm:$0xff] %vm1921_vm7, %v2702_v12  ;;  %v2704_v59 = vpop.eup %2703  ;;  %v1398_v36 = vmax.f32 %v3655_v4, 0.0  ;;  %v1463_v44 = vsub.f32 0.0, %v1431_v60 }
 0x23f   : > { %v1836_v19 = vadd.f32 %v1644_v24, %v1388_v6  ;;  %2721 = vlog2.f32 %v1663_v39  ;;  %v1660_v6 = vand.u32 2147483647, %v3659_v43  ;;  %v3701_v30 = vpop.eup %2705  ;;  %v1672_v52 = vadd.f32 1.0, %v2704_v59 }
 0x240   : > { %2723 = vpow2.f32 %v1515_v29  ;;  %v1675_v32 = vmul.f32 -0.5, %v2704_v59  ;;  %v1681_v28 = vadd.f32 1.0, %v3701_v30  ;;  %v1667_v20 = vadd.f32 1.0, %v1666_v46 }
 0x241   : > { %v1868_v5 = vadd.f32 1e-06, %v1836_v19  ;;  %v3713_v45 = vpop.eup %2707  ;;  %v1650_v27 = vmul.f32 %v3647_v17, %v1649_v14  ;;  %v1659_v42 = vmul.f32 %v3659_v43, %v1658_v3  ;;  %vm3717_vm14 = vcmp.lt.f32.partialorder %v1660_v6, 0.0004427343  ;;  %v1325_v17 = vpop.xlane.xlu1 %1324 }
 0x242   : > { %vm3721_vm15 = vcmp.lt.f32.partialorder %v1669_v9, 0.0004427343  ;;  %v1678_v63 = vand.u32 2147483647, %v2704_v59  ;;  %v1684_v8 = vmul.f32 -0.5, %v3701_v30  ;;  %v1690_v10 = vadd.f32 1.0, %v3713_v45 }
 0x243   : > { %2725 = vrcp.f32 %v1868_v5  ;;  %v1676_v39 = vadd.f32 1.0, %v1675_v32  ;;  %v1517_v12 = vmul.f32 1.442695, %v1463_v44  ;;  %v3728_v24 = vadd.f32 %v3396_v13, %v1321_v48 }
 0x244   : > { %2727 = vlog2.f32 %v1672_v52  ;;  %v1668_v23 = vmul.f32 %v3677_v62, %v1667_v20  ;;  %v1687_v46 = vand.u32 2147483647, %v3701_v30  ;;  %v3737_v29 = vadd.f32 %v3396_v13, %v1323_v57 }
 0x245   : > { %2729 = vlog2.f32 %v1681_v28  ;;  %v1693_v48 = vmul.f32 -0.5, %v3713_v45  ;;  %v3743_v3 = vadd.f32 %v3396_v13, %v1325_v17  ;;  %v1685_v52 = vadd.f32 1.0, %v1684_v8 }
 0x246   : > { %v2710_v37 = vpop.eup %2709  ;;  %2731 = vlog2.f32 %v1690_v10  ;;  %v1677_v28 = vmul.f32 %v2704_v59, %v1676_v39  ;;  %vm3749_vm0 = vcmp.lt.f32.partialorder %v1678_v63, 0.0004427343  ;;  %vm3757_vm1 = vcmp.lt.f32.partialorder %v1687_v46, 0.0004427343 }
 0x247   : > { %v2712_v47 = vpop.eup %2711  ;;  %v1647_v43 = vmul.f32 0.6931472, %v2710_v37  ;;  %2733 = vpow2.f32 %v1517_v12  ;;  %v1696_v59 = vand.u32 2147483647, %v3713_v45  ;;  %v1694_v10 = vadd.f32 1.0, %v1693_v48 }
 0x248   : > { %v2714_v19 = vpop.eup %2713  ;;  %1932 = vst.msk [vmem:[%s3575_s11 + $0x50] sm:$0xff] %vm1921_vm7, %v2712_v47 }
 0x249   : > { %v2716_v60 = vpop.eup %2715  ;;  %v1653_v5 = vsel %vm3705_vm13, %v1650_v27, %v1647_v43  ;;  %v1699_v14 = vadd.f32 1.0, %v2714_v19  ;;  %v1702_v31 = vmul.f32 -0.5, %v2714_v19  ;;  %v3753_v27 = vpop.f32.mrf.mxu0  ;;  %v1705_v17 = vand.u32 2147483647, %v2714_v19 }
 0x24a   : > { %v2718_v6 = vpop.eup %2717  ;;  %v1837_v62 = vadd.f32 %v1653_v5, %v1389_v38  ;;  %v1656_v9 = vmul.f32 0.6931472, %v2716_v60  ;;  %v1695_v58 = vmul.f32 %v3713_v45, %v1694_v10  ;;  %vm3779_vm2 = vcmp.lt.f32.partialorder %v1696_v59, 0.0004427343 }
 0x24b   : > { %v3747_v32 = vpop.eup %2719  ;;  %2735 = vlog2.f32 %v1699_v14  ;;  %v1708_v44 = vadd.f32 1.0, %v2718_v6  ;;  %v1711_v37 = vmul.f32 -0.5, %v2718_v6  ;;  %v1703_v12 = vadd.f32 1.0, %v1702_v31  ;;  %v3770_v51 = vpop.f32.mrf.mxu0 }
 0x24c   : > { %v2722_v13 = vpop.eup %2721  ;;  %v1869_v57 = vadd.f32 1e-06, %v1837_v62  ;;  %v1662_v50 = vsel %vm3717_vm14, %v1659_v42, %v1656_v9  ;;  %v1717_v47 = vadd.f32 1.0, %v3747_v32  ;;  %v1432_v42 = vand.u32 2147483647, %v3728_v24 }
 0x24d   : > { %v1838_v63 = vadd.f32 %v1662_v50, %v1390_v11  ;;  %v1665_v8 = vmul.f32 0.6931472, %v2722_v13  ;;  %2737 = vlog2.f32 %v1708_v44  ;;  %v3766_v53 = vpop.eup %2723  ;;  %v1714_v46 = vand.u32 2147483647, %v2718_v6  ;;  %v3789_v45 = vpop.f32.mrf.mxu0 }
 0x24e   : > { %2739 = vrcp.f32 %v1869_v57  ;;  %v1712_v5 = vadd.f32 1.0, %v1711_v37  ;;  %v1726_v48 = vadd.f32 1.0, %v3766_v53  ;;  %v1686_v62 = vmul.f32 %v3701_v30, %v1685_v52 }
 0x24f   : > { %v1870_v43 = vadd.f32 1e-06, %v1838_v63  ;;  %v1671_v39 = vsel %vm3721_vm15, %v1668_v23, %v1665_v8  ;;  %2741 = vlog2.f32 %v1717_v47  ;;  %vm3783_vm3 = vcmp.lt.f32.partialorder %v1705_v17, 0.0004427343  ;;  %v3812_v38 = vpop.f32.mrf.mxu0 }
 0x250   : > { %v2726_v11 = vpop.eup %2725  ;;  %v1839_v60 = vadd.f32 %v1671_v39, %v1391_v7  ;;  %v1720_v44 = vmul.f32 -0.5, %v3747_v32  ;;  %v1704_v57 = vmul.f32 %v2714_v19, %v1703_v12  ;;  %v1723_v30 = vand.u32 2147483647, %v3747_v32  ;;  %v1329_v39 = vpop.xlane.xlu1 %1328 }
 0x251   : > { %v2728_v14 = vpop.eup %2727  ;;  %1933 = vst.msk [vmem:[%s3575_s11 + $0x58] sm:$0xff] %vm1921_vm7, %v2726_v11  ;;  %2743 = vrcp.f32 %v1870_v43  ;;  %v1464_v52 = vsub.f32 0.0, %v1432_v42  ;;  %v1713_v59 = vmul.f32 %v2718_v6, %v1712_v5  ;;  %vm3793_vm4 = vcmp.lt.f32.partialorder %v1714_v46, 0.0004427343  ;;  %v1327_v42 = vpop.xlane.xlu0 %1326 }
 0x252   : > { %v2730_v9 = vpop.eup %2729  ;;  %v1871_v31 = vadd.f32 1e-06, %v1839_v60  ;;  %v1674_v21 = vmul.f32 0.6931472, %v2728_v14  ;;  %2745 = vlog2.f32 %v1726_v48  ;;  %v1433_v63 = vand.u32 2147483647, %v3737_v29 }
 0x253   : > { %v1683_v13 = vmul.f32 0.6931472, %v2730_v9  ;;  %v2732_v8 = vpop.eup %2731  ;;  %v1729_v17 = vmul.f32 -0.5, %v3766_v53  ;;  %v1519_v47 = vmul.f32 1.442695, %v1464_v52  ;;  %v1721_v20 = vadd.f32 1.0, %v1720_v44 }
 0x254   : > { %2747 = vrcp.f32 %v1871_v31  ;;  %v1680_v50 = vsel %vm3749_vm0, %v1677_v28, %v1674_v21  ;;  %v1692_v28 = vmul.f32 0.6931472, %v2732_v8  ;;  %v1465_v43 = vsub.f32 0.0, %v1433_v63  ;;  %v3805_v12 = vpop.eup %2733  ;;  %v3820_v44 = vld [vmem:[#allocation2] ss:$0 sm:$0xff]  ;;  %v1333_v7 = vpop.xlane.xlu1 %1332 }
 0x255   : > { %v1840_v19 = vadd.f32 %v1680_v50, %v1392_v54  ;;  %v1689_v10 = vsel %vm3757_vm1, %v1686_v62, %v1683_v13  ;;  %vm3807_vm5 = vcmp.lt.f32.partialorder %v1723_v30, 0.0004427343  ;;  %2749 = vpow2.f32 %v1519_v47  ;;  %v1331_v18 = vpop.xlane.xlu0 %1330 }
 0x256   : > { %v1841_v6 = vadd.f32 %v1689_v10, %v1393_v41  ;;  %v1434_v54 = vand.u32 2147483647, %v3743_v3  ;;  %v1698_v0 = vsel %vm3779_vm2, %v1695_v58, %v1692_v28  ;;  %v1732_v41 = vand.u32 2147483647, %v3766_v53 }
 0x257   : > { %v1872_v46 = vadd.f32 1e-06, %v1840_v19  ;;  %v1735_v5 = vadd.f32 1.0, %v3805_v12  ;;  %v1842_v48 = vadd.f32 %v1698_v0, %v1394_v16  ;;  %v1730_v62 = vadd.f32 1.0, %v1729_v17  ;;  %v3827_v16 = vpop.f32.mrf.mxu0 }
 0x258   : > { %v2736_v11 = vpop.eup %2735  ;;  %v1873_v60 = vadd.f32 1e-06, %v1841_v6  ;;  %v1521_v31 = vmul.f32 1.442695, %v1465_v43  ;;  %v1466_v21 = vsub.f32 0.0, %v1434_v54  ;;  %v3823_v23 = vadd.f32 %v3820_v44, %v1327_v42 }
 0x259   : > { %2751 = vrcp.f32 %v1872_v46  ;;  %v1701_v14 = vmul.f32 0.6931472, %v2736_v11  ;;  %v1874_v13 = vadd.f32 1e-06, %v1842_v48  ;;  %v1722_v63 = vmul.f32 %v3747_v32, %v1721_v20  ;;  %v3855_v37 = vpop.f32.mrf.mxu0 }
 0x25a   : > { %v2738_v9 = vpop.eup %2737  ;;  %2753 = vrcp.f32 %v1873_v60  ;;  %vm3834_vm6 = vcmp.lt.f32.partialorder %v1732_v41, 0.0004427343  ;;  %v1731_v10 = vmul.f32 %v3766_v53, %v1730_v62  ;;  %v1523_v17 = vmul.f32 1.442695, %v1466_v21  ;;  %v1335_v60 = vpop.xlane.xlu0 %1334 }
 0x25b   : > { %v2740_v58 = vpop.eup %2739  ;;  %v1707_v30 = vsel %vm3783_vm3, %v1704_v57, %v1701_v14  ;;  %v1710_v52 = vmul.f32 0.6931472, %v2738_v9  ;;  %2755 = vlog2.f32 %v1735_v5  ;;  %v1435_v42 = vand.u32 2147483647, %v3823_v23  ;;  %v3870_v48 = vpop.f32.mrf.mxu0 }
 0x25c   : > { %1934 = vst.msk [vmem:[%s3575_s11 + $0x60] sm:$0xff] %vm1921_vm7, %v2740_v58  ;;  %v1843_v50 = vadd.f32 %v1707_v30, %v1395_v55  ;;  %2757 = vpow2.f32 %v1521_v31  ;;  %v2742_v57 = vpop.eup %2741  ;;  %v3847_v28 = vadd.f32 %v3820_v44, %v1329_v39  ;;  %v3853_v53 = vadd.f32 %v3820_v44, %v1333_v7 }
 0x25d   : > { %2759 = vrcp.f32 %v1874_v13  ;;  %v1716_v19 = vsel %vm3793_vm4, %v1713_v59, %v1710_v52  ;;  %v1719_v32 = vmul.f32 0.6931472, %v2742_v57  ;;  %v3850_v59 = vadd.f32 %v3820_v44, %v1331_v18  ;;  %v3882_v8 = vpop.f32.mrf.mxu0 }
 0x25e   : > { %v2744_v47 = vpop.eup %2743  ;;  %v1875_v1 = vadd.f32 1e-06, %v1843_v50  ;;  %v1844_v55 = vadd.f32 %v1716_v19, %v1396_v26  ;;  %2761 = vpow2.f32 %v1523_v17  ;;  %v1738_v39 = vmul.f32 -0.5, %v3805_v12 }
 0x25f   : > { %v2746_v6 = vpop.eup %2745  ;;  %1935 = vst.msk [vmem:[%s3575_s11 + $0x68] sm:$0xff] %vm1921_vm7, %v2744_v47  ;;  %v1725_v26 = vsel %vm3807_vm5, %v1722_v63, %v1719_v32  ;;  %v1467_v54 = vsub.f32 0.0, %v1435_v42  ;;  %v1436_v11 = vand.u32 2147483647, %v3847_v28  ;;  %v1437_v15 = vand.u32 2147483647, %v3850_v59  ;;  %v1337_v63 = vpop.xlane.xlu1 %1336 }
 0x260   : > { %2763 = vrcp.f32 %v1875_v1  ;;  %v1876_v2 = vadd.f32 1e-06, %v1844_v55  ;;  %v1728_v20 = vmul.f32 0.6931472, %v2746_v6  ;;  %v1845_v46 = vadd.f32 %v1725_v26, %v1397_v34 }
 0x261   : > { %v2748_v43 = vpop.eup %2747  ;;  %v1525_v25 = vmul.f32 1.442695, %v1467_v54  ;;  %v1468_v34 = vsub.f32 0.0, %v1436_v11  ;;  %v1469_v62 = vsub.f32 0.0, %v1437_v15  ;;  %v1438_v9 = vand.u32 2147483647, %v3853_v53 }
 0x262   : > { %1936 = vst.msk [vmem:[%s3575_s11 + $0x70] sm:$0xff] %vm1921_vm7, %v2748_v43  ;;  %2765 = vrcp.f32 %v1876_v2  ;;  %v1734_v0 = vsel %vm3834_vm6, %v1731_v10, %v1728_v20  ;;  %v1877_v41 = vadd.f32 1e-06, %v1845_v46  ;;  %v3872_v14 = vpop.eup %2749  ;;  %v3876_v31 = vadd.f32 %v3820_v44, %v1335_v60  ;;  %v2446_v2 = vpop.f32.mrf.mxu0 }
 0x263   : > { %v1846_v5 = vadd.f32 %v1734_v0, %v1398_v36  ;;  %v1739_v58 = vadd.f32 1.0, %v1738_v39  ;;  %v1744_v4 = vadd.f32 1.0, %v3872_v14  ;;  %v1741_v13 = vand.u32 2147483647, %v3805_v12 }
 0x264   : > { %2767 = vrcp.f32 %v1877_v41  ;;  %v1527_v30 = vmul.f32 1.442695, %v1468_v34  ;;  %v1529_v52 = vmul.f32 1.442695, %v1469_v62  ;;  %v1470_v50 = vsub.f32 0.0, %v1438_v9  ;;  %v751_v15 = vpop.f32.mrf.mxu0 }
 0x265   : > { %v1878_v21 = vadd.f32 1e-06, %v1846_v5  ;;  %2769 = vpow2.f32 %v1525_v25  ;;  %v1399_v57 = vmax.f32 %v3681_v35, 0.0  ;;  %v1439_v19 = vand.u32 2147483647, %v3876_v31 }
 0x266   : > { %v2752_v36 = vpop.eup %2751  ;;  %v1740_v47 = vmul.f32 %v3805_v12, %v1739_v58  ;;  %v1531_v1 = vmul.f32 1.442695, %v1470_v50  ;;  %vm1742_vm8 = vcmp.lt.f32.partialorder %v1741_v13, 0.0004427343  ;;  %v3893_v42 = vadd.f32 %v3820_v44, %v1337_v63 }
 0x267   : > { %v2754_v18 = vpop.eup %2753  ;;  %1937 = vst.msk [vmem:[%s3575_s11 + $0x78] sm:$0xff] %vm1921_vm7, %v2752_v36  ;;  %2771 = vrcp.f32 %v1878_v21  ;;  %v1471_v6 = vsub.f32 0.0, %v1439_v19  ;;  %v1747_v43 = vmul.f32 -0.5, %v3872_v14  ;;  %v2280_v11 = vpack.c.bf16 %v3675_v61, %v3638_v22 }
 0x268   : > { %v2756_v7 = vpop.eup %2755  ;;  %1938 = vst.msk [vmem:[%s3575_s11 + $0x80] sm:$0xff] %vm1921_vm7, %v2754_v18  ;;  %2773 = vlog2.f32 %v1744_v4  ;;  %v1440_v54 = vand.u32 2147483647, %v3893_v42  ;;  %v2275_v0 = vpack.c.bf16 %v3695_v56, %v3657_v49  ;;  %v2290_v5 = vpack.c.bf16 %v3753_v27, %v3710_v33 }
 0x269   : > { %v3888_v10 = vpop.eup %2757  ;;  %v1737_v17 = vmul.f32 0.6931472, %v2756_v7  ;;  %2775 = vpow2.f32 %v1527_v30  ;;  %v1533_v46 = vmul.f32 1.442695, %v1471_v6  ;;  %2320 = vst [vmem:[%s3392_s21 + $0x48] sm:$0xff] %v2280_v11   ;;  %v2285_v22 = vpack.c.bf16 %v3770_v51, %v3730_v40 }
 0x26a   : > { %v2760_v55 = vpop.eup %2759  ;;  %v1753_v32 = vadd.f32 1.0, %v3888_v10  ;;  %2777 = vpow2.f32 %v1529_v52  ;;  %v1472_v41 = vsub.f32 0.0, %v1440_v54  ;;  %v1748_v61 = vadd.f32 1.0, %v1747_v43  ;;  %2319 = vst [vmem:[%s3392_s21 + $0x40] sm:$0xff] %v2275_v0   ;;  %2322 = vst [vmem:[%s3392_s21 + $0x58] sm:$0xff] %v2290_v5  }
 0x26b   : > { %1939 = vst.msk [vmem:[%s3575_s11 + $0x88] sm:$0xff] %vm1921_vm7, %v2760_v55  ;;  %v1743_v35 = vsel %vm1742_vm8, %v1740_v47, %v1737_v17  ;;  %2779 = vpow2.f32 %v1531_v1  ;;  %v3897_v12 = vpop.eup %2761  ;;  %v2300_v49 = vpack.c.bf16 %v3827_v16, %v3789_v45  ;;  %v2295_v56 = vpack.c.bf16 %v3855_v37, %v3812_v38  ;;  %2321 = vst [vmem:[%s3392_s21 + $0x50] sm:$0xff] %v2285_v22  }
 0x26c   : > { %v1847_v26 = vadd.f32 %v1743_v35, %v1399_v57  ;;  %2781 = vlog2.f32 %v1753_v32  ;;  %v1762_v44 = vadd.f32 1.0, %v3897_v12  ;;  %v1756_v40 = vmul.f32 -0.5, %v3888_v10 }
 0x26d   : > { %v2764_v20 = vpop.eup %2763  ;;  %v1535_v27 = vmul.f32 1.442695, %v1472_v41  ;;  %v2310_v51 = vpack.c.bf16 %v2446_v2, %v3870_v48  ;;  %v2305_v45 = vpack.c.bf16 %v751_v15, %v3882_v8  ;;  %v1750_v16 = vand.u32 2147483647, %v3872_v14  ;;  %2324 = vst [vmem:[%s3392_s21 + $0x68] sm:$0xff] %v2300_v49   ;;  %2323 = vst [vmem:[%s3392_s21 + $0x60] sm:$0xff] %v2295_v56  }
 0x26e   : > { %1940 = vst.msk [vmem:[%s3575_s11 + $0x90] sm:$0xff] %vm1921_vm7, %v2764_v20  ;;  %v1879_v39 = vadd.f32 1e-06, %v1847_v26  ;;  %2783 = vlog2.f32 %v1762_v44  ;;  %v1765_v48 = vmul.f32 -0.5, %v3897_v12 }
 0x26f   : > { %v2766_v60 = vpop.eup %2765  ;;  %2326 = vst [vmem:[%s3392_s21 + $0x78] sm:$0xff] %v2310_v51   ;;  %2325 = vst [vmem:[%s3392_s21 + $0x70] sm:$0xff] %v2305_v45  }
 0x270   : > { %1941 = vst.msk [vmem:[%s3575_s11 + $0x98] sm:$0xff] %vm1921_vm7, %v2766_v60  ;;  %2785 = vrcp.f32 %v1879_v39 }
 0x271   : > { %2787 = vpow2.f32 %v1533_v46  ;;  %v2768_v33 = vpop.eup %2767 }
 0x272   : > { %v3934_v38 = vpop.eup %2769  ;;  %1942 = vst.msk [vmem:[%s3575_s11 + $0xa0] sm:$0xff] %vm1921_vm7, %v2768_v33  ;;  %2789 = vpow2.f32 %v1535_v27 }
 0x273   : > { %v1771_v25 = vadd.f32 1.0, %v3934_v38 }
 0x274   : > { %v2772_v37 = vpop.eup %2771 }
 0x275   : > { %v2774_v34 = vpop.eup %2773  ;;  %1943 = vst.msk [vmem:[%s3575_s11 + $0xa8] sm:$0xff] %vm1921_vm7, %v2772_v37 }
 0x276   : > { %2943 = shalt.err (!%p2940_p10)
}
 0x277   : > { %s2944_s21 = scalar_lea.hbm %s3925_s0, 2048  ;;  %s2948_s23 = scalar_lea.hbm %s4062_s7, 4096 }
 0x278   : > { %p2945_p3 = scmp.ne.s32.totalorder %s3925_s0, %s2944_s21  ;;  %p2949_p1 = scmp.lt.s32.totalorder %s3925_s0, %s4062_s7 }
 0x279   : > { %p2950_p4 = scmp.lt.s32.totalorder %s2948_s23, %s2944_s21 }
 0x27a   : > { %p2946_p2 = pnand %p2945_p3, %p4136_p12 }
 0x27b   : > { %p2951_p6 = por %p2950_p4, %p2949_p1 }
 0x27c   : > { %p2947_p11 = pneg %p2946_p2 }
 0x27e   : > { %p2952_p8 = pnand %p2951_p6, %p2947_p11 }
 0x280   : > { %2955 = shalt.err (!%p2952_p8)
}
 0x281   : > { %s3017_s20 = smov 64   ;;  %s3018_s6 = smov 4   ;;  %v3970_v62 = vpop.eup %2775  ;;  %v1746_v9 = vmul.f32 0.6931472, %v2774_v34  ;;  %v1749_v21 = vmul.f32 %v3872_v14, %v1748_v61  ;;  %v1757_v58 = vadd.f32 1.0, %v1756_v40  ;;  %2791 = vlog2.f32 %v1771_v25 }
 0x282   : > { %2539 = dma.vmem_to_hbm [thread:$0]  (%p4136_p12), %s3927_s18, 2048, %s3925_s0, %s1955_s14, %s3017_s20, %s3017_s20, %s3018_s6   ;;  %v3973_v4 = vpop.eup %2777  ;;  %v1400_v36 = vmax.f32 %v3728_v24, 0.0  ;;  %vm1751_vm9 = vcmp.lt.f32.partialorder %v1750_v16, 0.0004427343  ;;  %v1759_v13 = vand.u32 2147483647, %v3888_v10 }
 0x283   : > { %v1780_v30 = vadd.f32 1.0, %v3970_v62  ;;  %v3978_v52 = vpop.eup %2779  ;;  %v1752_v18 = vsel %vm1751_vm9, %v1749_v21, %v1746_v9  ;;  %v1789_v50 = vadd.f32 1.0, %v3973_v4  ;;  %v1766_v7 = vadd.f32 1.0, %v1765_v48 }
 0x284   : > { %v2782_v63 = vpop.eup %2781  ;;  %v1848_v8 = vadd.f32 %v1752_v18, %v1400_v36  ;;  %v1768_v14 = vand.u32 2147483647, %v3897_v12  ;;  %v1758_v24 = vmul.f32 %v3888_v10, %v1757_v58  ;;  %v1774_v19 = vmul.f32 -0.5, %v3934_v38 }
 0x285   : > { %2793 = vlog2.f32 %v1780_v30  ;;  %v1755_v57 = vmul.f32 0.6931472, %v2782_v63  ;;  %v1401_v47 = vmax.f32 %v3737_v29, 0.0  ;;  %vm1760_vm10 = vcmp.lt.f32.partialorder %v1759_v13, 0.0004427343  ;;  %v2784_v55 = vpop.eup %2783 }
 0x286   : > { %2795 = vlog2.f32 %v1789_v50  ;;  %v1880_v17 = vadd.f32 1e-06, %v1848_v8  ;;  %v1798_v1 = vadd.f32 1.0, %v3978_v52  ;;  %v2786_v35 = vpop.eup %2785  ;;  %v1764_v2 = vmul.f32 0.6931472, %v2784_v55 }
 0x287   : > { %v1761_v32 = vsel %vm1760_vm10, %v1758_v24, %v1755_v57  ;;  %v1767_v26 = vmul.f32 %v3897_v12, %v1766_v7  ;;  %v3987_v20 = vpop.eup %2787  ;;  %1944 = vst.msk [vmem:[%s3575_s11 + $0xb0] sm:$0xff] %vm1921_vm7, %v2786_v35  ;;  %v1402_v10 = vmax.f32 %v3743_v3, 0.0  ;;  %vm1769_vm11 = vcmp.lt.f32.partialorder %v1768_v14, 0.0004427343 }
 0x288   : > { %2797 = vrcp.f32 %v1880_v17  ;;  %v1849_v6 = vadd.f32 %v1761_v32, %v1401_v47  ;;  %v1775_v43 = vadd.f32 1.0, %v1774_v19  ;;  %v1783_v46 = vmul.f32 -0.5, %v3970_v62  ;;  %v3995_v60 = vpop.eup %2789 }
 0x289   : > { %2799 = vlog2.f32 %v1798_v1  ;;  %v1770_v44 = vsel %vm1769_vm11, %v1767_v26, %v1764_v2  ;;  %v1807_v39 = vadd.f32 1.0, %v3987_v20  ;;  %v1792_v11 = vmul.f32 -0.5, %v3973_v4 }
 0x28a   : > { %v1881_v29 = vadd.f32 1e-06, %v1849_v6  ;;  %v1850_v54 = vadd.f32 %v1770_v44, %v1402_v10  ;;  %v1777_v12 = vand.u32 2147483647, %v3934_v38  ;;  %v1776_v15 = vmul.f32 %v3934_v38, %v1775_v43 }
 0x28b   : > { %v1784_v41 = vadd.f32 1.0, %v1783_v46  ;;  %v1786_v5 = vand.u32 2147483647, %v3970_v62  ;;  %v1816_v22 = vadd.f32 1.0, %v3995_v60  ;;  %v1793_v49 = vadd.f32 1.0, %v1792_v11 }
 0x28c   : > { %2801 = vrcp.f32 %v1881_v29  ;;  %v1882_v0 = vadd.f32 1e-06, %v1850_v54  ;;  %v1801_v56 = vmul.f32 -0.5, %v3978_v52  ;;  %v1403_v33 = vmax.f32 %v3823_v23, 0.0 }
 0x28d   : > { %2803 = vlog2.f32 %v1807_v39  ;;  %vm1778_vm12 = vcmp.lt.f32.partialorder %v1777_v12, 0.0004427343  ;;  %v1795_v40 = vand.u32 2147483647, %v3973_v4  ;;  %v1404_v45 = vmax.f32 %v3847_v28, 0.0 }
 0x28e   : > { %v2792_v3 = vpop.eup %2791  ;;  %2805 = vrcp.f32 %v1882_v0  ;;  %v1405_v38 = vmax.f32 %v3850_v59, 0.0  ;;  %v1785_v34 = vmul.f32 %v3970_v62, %v1784_v41  ;;  %vm1787_vm13 = vcmp.lt.f32.partialorder %v1786_v5, 0.0004427343 }
 0x28f   : > { %v1773_v61 = vmul.f32 0.6931472, %v2792_v3  ;;  %2807 = vlog2.f32 %v1816_v22  ;;  %v1794_v23 = vmul.f32 %v3973_v4, %v1793_v49  ;;  %v1802_v9 = vadd.f32 1.0, %v1801_v56 }
 0x290   : > { %v1810_v21 = vmul.f32 -0.5, %v3987_v20  ;;  %vm1796_vm14 = vcmp.lt.f32.partialorder %v1795_v40, 0.0004427343  ;;  %v1804_v28 = vand.u32 2147483647, %v3978_v52  ;;  %v1406_v50 = vmax.f32 %v3853_v53, 0.0 }
 0x291   : > { %v1779_v51 = vsel %vm1778_vm12, %v1776_v15, %v1773_v61  ;;  %v1819_v4 = vmul.f32 -0.5, %v3995_v60  ;;  %v1803_v7 = vmul.f32 %v3978_v52, %v1802_v9  ;;  %v1813_v24 = vand.u32 2147483647, %v3987_v20 }
 0x292   : > { %v2794_v27 = vpop.eup %2793  ;;  %v1851_v37 = vadd.f32 %v1779_v51, %v1403_v33  ;;  %v1811_v14 = vadd.f32 1.0, %v1810_v21  ;;  %vm1805_vm15 = vcmp.lt.f32.partialorder %v1804_v28, 0.0004427343  ;;  %v1822_v52 = vand.u32 2147483647, %v3995_v60 }
 0x293   : > { %v2796_v16 = vpop.eup %2795  ;;  %v1782_v25 = vmul.f32 0.6931472, %v2794_v27  ;;  %v1820_v1 = vadd.f32 1.0, %v1819_v4  ;;  %v1407_v2 = vmax.f32 %v3876_v31, 0.0  ;;  %vm1814_vm0 = vcmp.lt.f32.partialorder %v1813_v24, 0.0004427343 }
 0x294   : > { %v1791_v48 = vmul.f32 0.6931472, %v2796_v16  ;;  %v1883_v58 = vadd.f32 1e-06, %v1851_v37  ;;  %v1812_v32 = vmul.f32 %v3987_v20, %v1811_v14  ;;  %v1408_v20 = vmax.f32 %v3893_v42, 0.0 }
 0x295   : > { %v1788_v36 = vsel %vm1787_vm13, %v1785_v34, %v1782_v25  ;;  %v2798_v13 = vpop.eup %2797  ;;  %v1821_v44 = vmul.f32 %v3995_v60, %v1820_v1  ;;  %vm1823_vm1 = vcmp.lt.f32.partialorder %v1822_v52, 0.0004427343 }
 0x296   : > { %v1852_v59 = vadd.f32 %v1788_v36, %v1404_v45  ;;  %v1797_v30 = vsel %vm1796_vm14, %v1794_v23, %v1791_v48  ;;  %v2800_v18 = vpop.eup %2799  ;;  %1945 = vst.msk [vmem:[%s3575_s11 + $0xb8] sm:$0xff] %vm1921_vm7, %v2798_v13  ;;  %2809 = vrcp.f32 %v1883_v58 }
 0x297   : > { %v1853_v62 = vadd.f32 %v1797_v30, %v1405_v38  ;;  %v1800_v8 = vmul.f32 0.6931472, %v2800_v18 }
 0x298   : > { %v1884_v63 = vadd.f32 1e-06, %v1852_v59 }
 0x299   : > { %v1885_v57 = vadd.f32 1e-06, %v1853_v62  ;;  %v2802_v19 = vpop.eup %2801  ;;  %v1806_v17 = vsel %vm1805_vm15, %v1803_v7, %v1800_v8 }
 0x29a   : > { %2811 = vrcp.f32 %v1884_v63  ;;  %v2804_v47 = vpop.eup %2803  ;;  %1946 = vst.msk [vmem:[%s3575_s11 + $0xc0] sm:$0xff] %vm1921_vm7, %v2802_v19  ;;  %v1854_v53 = vadd.f32 %v1806_v17, %v1406_v50 }
 0x29b   : > { %2813 = vrcp.f32 %v1885_v57  ;;  %v1809_v55 = vmul.f32 0.6931472, %v2804_v47  ;;  %v2806_v35 = vpop.eup %2805 }
 0x29c   : > { %v1886_v6 = vadd.f32 1e-06, %v1854_v53  ;;  %v2808_v26 = vpop.eup %2807  ;;  %1947 = vst.msk [vmem:[%s3575_s11 + $0xc8] sm:$0xff] %vm1921_vm7, %v2806_v35 }
 0x29d   : > { %v1815_v10 = vsel %vm1814_vm0, %v1812_v32, %v1809_v55  ;;  %v1818_v29 = vmul.f32 0.6931472, %v2808_v26 }
 0x29e   : > { %2815 = vrcp.f32 %v1886_v6  ;;  %v1855_v43 = vadd.f32 %v1815_v10, %v1407_v2 }
 0x29f   : > { %v1824_v31 = vsel %vm1823_vm1, %v1821_v44, %v1818_v29 }
 0x2a0   : > { %v1887_v46 = vadd.f32 1e-06, %v1855_v43  ;;  %v1856_v39 = vadd.f32 %v1824_v31, %v1408_v20 }
 0x2a2   : > { %2817 = vrcp.f32 %v1887_v46  ;;  %v1888_v11 = vadd.f32 1e-06, %v1856_v39 }
 0x2a3   : > { %v2810_v54 = vpop.eup %2809 }
 0x2a4   : > { %1948 = vst.msk [vmem:[%s3575_s11 + $0xd0] sm:$0xff] %vm1921_vm7, %v2810_v54  ;;  %2819 = vrcp.f32 %v1888_v11 }
 0x2a7   : > { %v2812_v12 = vpop.eup %2811 }
 0x2a8   : > { %v2814_v0 = vpop.eup %2813  ;;  %1949 = vst.msk [vmem:[%s3575_s11 + $0xd8] sm:$0xff] %vm1921_vm7, %v2812_v12 }
 0x2a9   : > { %1950 = vst.msk [vmem:[%s3575_s11 + $0xe0] sm:$0xff] %vm1921_vm7, %v2814_v0 }
 0x2ab   : > { %v2816_v60 = vpop.eup %2815 }
 0x2ac   : > { %1951 = vst.msk [vmem:[%s3575_s11 + $0xe8] sm:$0xff] %vm1921_vm7, %v2816_v60 }
 0x2af   : > { %v2818_v42 = vpop.eup %2817 }
 0x2b0   : > { %1952 = vst.msk [vmem:[%s3575_s11 + $0xf0] sm:$0xff] %vm1921_vm7, %v2818_v42 }
 0x2b1   : > { %v2820_v3 = vpop.eup %2819 }
 0x2b2   : > { %1953 = vst.msk [vmem:[%s3575_s11 + $0xf8] sm:$0xff] %vm1921_vm7, %v2820_v3 }
 0x2b3 PF: > { %s4137_s27 = sld [smem:[#allocation16_spill]]  ;;  %s1992_s15 = sand.u32 1, %s2994_s29  }
 0x2b4   : > { %p4139_p7 = scmp.ge.s32.totalorder %s3006_s10, 2  ;;  %s1993_s18 = scalar_lea.sflag [#allocation5], %s1992_s15 }
 0x2b9   : > { %p4138_p12 = scmp.ne.s32.totalorder %s4137_s27, 0 }
 0x2bb   : > { %p2556_p0 = pnand %p4139_p7, %p4138_p12 }
 0x2bd   : > { %p2557_p5 = pneg %p2556_p0 }
 0x2bf   : > { %2989 = dma.done.wait (%p2557_p5), %s1993_s18, 2048  }
 0x2c0   : > { %2991 = vsyncadd (%p2557_p5), %s1993_s18, 4294965248  ;;  %s4140_s10 = sld [smem:[#allocation17_spill]]  ;;  %s4141_s29 = smov %s2998_s30 }
 0x2c1   : > { %s4142_s30 = smov %s3002_s9  ;;  %s4143_s9 = smov %s3144_s26 }
 0x2c6   : > { %p25_p9 = scmp.ge.s32.totalorder %s4140_s10, 4  }
 0x2c8   :  { %27 = sbr.rel (!%p25_p9) target bundleno = 9 (0x9), region = 124 }
 0x2cd   :  { %2006 = vsyncpa [#allocation4], 1 }
 0x2ce   :  { %2008 = vsyncpa [#allocation4 + $0x1], 1 }
 0x2cf   :  { %2009 = vsyncpa [#allocation7], 1 }
 0x2d0   :  { %2010 = vsyncpa [#allocation5], 1 }
 0x2d1   :  { %2012 = vsyncpa [#allocation5 + $0x1], 1 }

</bundles_post_ra>
